<compile_context>
chip_gen: v7x
topology: tpu7x:2x2x1
jax: 0.10.0
libtpu: 0.0.40
codegen_flags: <defaults>
</compile_context>

<pallas_src>
import functools

import jax
import jax.numpy as jnp
from jax.experimental import pallas as pl
from jax.experimental.pallas import tpu as pltpu

# ----------------------------- configuration --------------------------------
B = 2          # batch (real)
T = 8          # sequence length
FEAT = 32      # feature_size
HID = 32       # hidden_size
NCLS = 8       # num_classes
NLAYERS = 2    # num_layers (stacked, unidirectional)
BATCH_TILE = 8 # f32 sublane count; batch is padded up to a multiple of this


def _default_matmul_dtype():
    """bf16 MXU operands on v6e/v7x, f32 elsewhere (v5e has no bf16 VPU/EUP,
    but elementwise math stays f32 on every generation anyway)."""
    try:
        kind = jax.devices()[0].device_kind.lower()
    except Exception:
        return jnp.float32
    if ("v6" in kind) or ("v7" in kind):
        return jnp.bfloat16
    return jnp.float32


# --------------------------- fused model kernel ------------------------------
def model_kernel(x_ref,
                 wih1_ref, whh1_ref, b1_ref,
                 wih2_ref, whh2_ref, b2_ref,
                 wfc_ref, bfc_ref,
                 out_ref,
                 *, hid, seq_len, mm_dtype):
    """x_ref: (T, Bt, F).  Gate columns are pre-permuted to [i | f | o | g].
    b* = b_ih + b_hh (combined).  wfc already carries the 1/T pooling scale."""
    f32 = jnp.float32
    bt = x_ref.shape[1]
    fin = x_ref.shape[2]

    def mm(a, b):
        return jnp.dot(a.astype(mm_dtype), b, preferred_element_type=f32)

    # Weight casts hoisted out of the recurrence.
    whh1 = whh1_ref[...].astype(mm_dtype)
    wih2 = wih2_ref[...].astype(mm_dtype)
    whh2 = whh2_ref[...].astype(mm_dtype)
    b2 = b2_ref[...]

    # Hoisted layer-1 input projection: ONE batched MXU op for all timesteps,
    # produced directly in (T, Bt, 4H) so xg1[t] is a leading-axis select.
    x = x_ref[...]                                          # (T, Bt, F)
    xg1 = (mm(x.reshape(seq_len * bt, fin), wih1_ref[...].astype(mm_dtype))
           + b1_ref[...]).reshape(seq_len, bt, 4 * hid)

    def cell(gates, c):
        # Permuted gate layout [i | f | o | g]: one contiguous sigmoid slice,
        # one tanh slice (3 EUP pushes per cell including tanh(c)).
        sig = jax.nn.sigmoid(gates[:, : 3 * hid])
        g = jnp.tanh(gates[:, 3 * hid:])
        i = sig[:, :hid]
        f = sig[:, hid:2 * hid]
        o = sig[:, 2 * hid:3 * hid]
        c_new = f * c + i * g
        h_new = o * jnp.tanh(c_new)
        return h_new, c_new

    zeros = jnp.zeros((bt, hid), f32)

    # ---- prologue: layer-1 cell 0 (h1 == 0, so the h @ W_hh term vanishes) --
    h1, c1 = cell(xg1[0], zeros)
    h1_prev = h1
    h2, c2 = zeros, zeros
    hsum = zeros

    # ---- skewed steady state: layer-1 cell t and layer-2 cell t-1 are ------
    # ---- independent -> two overlappable recurrence chains per super-step. --
    for t in range(1, seq_len):                              # static unroll, T small
        g2 = mm(h1_prev, wih2) + b2 + mm(h2.astype(mm_dtype), whh2)
        g1 = xg1[t] + mm(h1.astype(mm_dtype), whh1)
        h2, c2 = cell(g2, c2)
        h1, c1 = cell(g1, c1)
        hsum = hsum + h2                                     # running mean-pool sum
        h1_prev = h1

    # ---- epilogue: last layer-2 cell ----------------------------------------
    g2 = mm(h1_prev, wih2) + b2 + mm(h2.astype(mm_dtype), whh2)
    h2, c2 = cell(g2, c2)
    hsum = hsum + h2

    # AdaptiveAvgPool1d(1) commutes with the affine FC; 1/T folded into wfc.
    logits = mm(hsum, wfc_ref[...].astype(mm_dtype)) + bfc_ref[...]
    out_ref[...] = jax.nn.sigmoid(logits)                    # (Bt, C)


# ------------------------ param prep for the kernel --------------------------
def prepare_kernel_params(params, seq_len):
    """Permute gate columns [i,f,g,o] -> [i,f,o,g] consistently across W_ih^T,
    W_hh^T and the combined bias, and fold the 1/T pooling scale into fc_w_t."""
    def permute(w):
        i, f, g, o = jnp.split(w, 4, axis=-1)
        return jnp.concatenate([i, f, o, g], axis=-1)

    layers = [dict(wih_t=permute(lp["wih_t"]),
                   whh_t=permute(lp["whh_t"]),
                   b=permute(lp["b"])) for lp in params["lstm"]]
    return dict(lstm=layers,
                fc_w_t=params["fc_w_t"] * (1.0 / seq_len),
                fc_b=params["fc_b"])


def speech_classifier_forward(x_btf, params, *, batch_tile=BATCH_TILE, mm_dtype=None):
    """x_btf: (B, T, feature), batch_first like nn.LSTM. Returns (B, num_classes, 1)."""
    assert len(params["lstm"]) == 2, "kernel is specialized to num_layers=2"
    if mm_dtype is None:
        mm_dtype = _default_matmul_dtype()

    bn, tn, feat = x_btf.shape
    hid = params["lstm"][0]["whh_t"].shape[0]
    ncls = params["fc_w_t"].shape[1]

    kp = prepare_kernel_params(params, tn)
    l1, l2 = kp["lstm"]

    # Layout plumbing done in the wrapper (free): (B,T,F) -> (T,B,F), batch
    # padded to a multiple of the batch tile (>= 8 f32 sublanes).
    b_pad = ((bn + batch_tile - 1) // batch_tile) * batch_tile
    b_pad = max(b_pad, batch_tile)
    x_tbf = jnp.transpose(x_btf, (1, 0, 2))
    if b_pad != bn:
        x_tbf = jnp.pad(x_tbf, ((0, 0), (0, b_pad - bn), (0, 0)))

    def wspec(arr):  # full-array block, constant block index -> resident weight
        return pl.BlockSpec(arr.shape, lambda b, _n=len(arr.shape): (0,) * _n)

    out = pl.pallas_call(
        functools.partial(model_kernel, hid=hid, seq_len=tn, mm_dtype=mm_dtype),
        out_shape=jax.ShapeDtypeStruct((b_pad, ncls), jnp.float32),
        grid=(b_pad // batch_tile,),
        in_specs=[
            pl.BlockSpec((tn, batch_tile, feat), lambda b: (0, b, 0)),
            wspec(l1["wih_t"]), wspec(l1["whh_t"]), wspec(l1["b"]),
            wspec(l2["wih_t"]), wspec(l2["whh_t"]), wspec(l2["b"]),
            wspec(kp["fc_w_t"]), wspec(kp["fc_b"]),
        ],
        out_specs=pl.BlockSpec((batch_tile, ncls), lambda b: (b, 0)),
        compiler_params=pltpu.CompilerParams(
            dimension_semantics=("parallel",)),
    )(x_tbf, l1["wih_t"], l1["whh_t"], l1["b"],
      l2["wih_t"], l2["whh_t"], l2["b"],
      kp["fc_w_t"], kp["fc_b"])

    return out[:bn, :, None]                                 # (B, num_classes, 1)


# -------------------------- pure-JAX reference -------------------------------
def ref_forward(x_btf, params):
    def one_layer(seq_tbf, wih_t, whh_t, b):
        bn, hid = seq_tbf.shape[1], whh_t.shape[0]

        def step(carry, x_t):
            h, c = carry
            gates = x_t @ wih_t + h @ whh_t + b[0]
            i, f, g, o = jnp.split(gates, 4, axis=-1)        # PyTorch gate order
            i, f, o = jax.nn.sigmoid(i), jax.nn.sigmoid(f), jax.nn.sigmoid(o)
            g = jnp.tanh(g)
            c = f * c + i * g
            h = o * jnp.tanh(c)
            return (h, c), h

        init = (jnp.zeros((bn, hid), jnp.float32), jnp.zeros((bn, hid), jnp.float32))
        _, hs = jax.lax.scan(step, init, seq_tbf)
        return hs

    seq = jnp.transpose(x_btf, (1, 0, 2))                    # (T, B, F)
    for lp in params["lstm"]:
        seq = one_layer(seq, lp["wih_t"], lp["whh_t"], lp["b"])
    logits = jnp.einsum("tbh,hc->tbc", seq, params["fc_w_t"]) + params["fc_b"][0]
    pooled = jnp.mean(logits, axis=0)
    return jax.nn.sigmoid(pooled)[:, :, None]


# --------------------------------- params ------------------------------------
def init_params(key):
    scale = 1.0 / jnp.sqrt(HID)   # PyTorch LSTM/Linear default init range

    def u(k, shape):
        return jax.random.uniform(k, shape, jnp.float32, -scale, scale)

    layers = []
    for layer in range(NLAYERS):
        fin = FEAT if layer == 0 else HID
        key, k1, k2, k3, k4 = jax.random.split(key, 5)
        wih_t = u(k1, (fin, 4 * HID))                        # W_ih^T
        whh_t = u(k2, (HID, 4 * HID))                        # W_hh^T
        b = u(k3, (1, 4 * HID)) + u(k4, (1, 4 * HID))        # b_ih + b_hh
        layers.append(dict(wih_t=wih_t, whh_t=whh_t, b=b))

    key, k5, k6 = jax.random.split(key, 3)
    fc_w_t = u(k5, (HID, NCLS))                              # fc weight^T
    fc_b = u(k6, (1, NCLS))
    return dict(lstm=layers, fc_w_t=fc_w_t, fc_b=fc_b)


# ---------------------------------- main --------------------------------------
if __name__ == "__main__":
    key = jax.random.PRNGKey(0)
    key, kx, kp = jax.random.split(key, 3)
    x = jax.random.normal(kx, (B, T, FEAT), jnp.float32)     # (batch, seq, feature)
    params = init_params(kp)

    mm_dtype = _default_matmul_dtype()
    out = jax.block_until_ready(
        speech_classifier_forward(x, params, mm_dtype=mm_dtype))
    ref = jax.block_until_ready(ref_forward(x, params))

    assert out.shape == (B, NCLS, 1), out.shape
    assert bool(jnp.all(jnp.isfinite(out)))
    tol = 2e-3 if mm_dtype == jnp.float32 else 2e-2          # bf16 MXU path is looser
    assert bool(jnp.allclose(out, ref, rtol=tol, atol=tol)), (
        float(jnp.max(jnp.abs(out - ref))))

    print("KERNEL_OK")
</pallas_src>

<mosaic_0001>
module attributes {stable_mosaic.version = 11 : i64} {
  func.func @model_kernel(%arg0: i32, %arg1: memref<8x8x32xf32, #tpu.memory_space<vmem>>, %arg2: memref<32x128xf32, #tpu.memory_space<vmem>>, %arg3: memref<32x128xf32, #tpu.memory_space<vmem>>, %arg4: memref<1x128xf32, #tpu.memory_space<vmem>>, %arg5: memref<32x128xf32, #tpu.memory_space<vmem>>, %arg6: memref<32x128xf32, #tpu.memory_space<vmem>>, %arg7: memref<1x128xf32, #tpu.memory_space<vmem>>, %arg8: memref<32x8xf32, #tpu.memory_space<vmem>>, %arg9: memref<1x8xf32, #tpu.memory_space<vmem>>, %arg10: memref<8x8xf32, #tpu.memory_space<vmem>>) attributes {dimension_semantics = [#tpu.dimension_semantics<parallel>], iteration_bounds = array<i64: 1>, scalar_prefetch = 0 : i64, scratch_operands = 0 : i64, tpu.core_type = #tpu.core_type<tc>, window_params = [{transform_indices = @transform_0, window_bounds = array<i64: 8, 8, 32>}, {pipeline_mode = #tpu.pipeline_mode<synchronous>, transform_indices = @transform_1, window_bounds = array<i64: 32, 128>}, {pipeline_mode = #tpu.pipeline_mode<synchronous>, transform_indices = @transform_2, window_bounds = array<i64: 32, 128>}, {pipeline_mode = #tpu.pipeline_mode<synchronous>, transform_indices = @transform_3, window_bounds = array<i64: 1, 128>}, {pipeline_mode = #tpu.pipeline_mode<synchronous>, transform_indices = @transform_4, window_bounds = array<i64: 32, 128>}, {pipeline_mode = #tpu.pipeline_mode<synchronous>, transform_indices = @transform_5, window_bounds = array<i64: 32, 128>}, {pipeline_mode = #tpu.pipeline_mode<synchronous>, transform_indices = @transform_6, window_bounds = array<i64: 1, 128>}, {pipeline_mode = #tpu.pipeline_mode<synchronous>, transform_indices = @transform_7, window_bounds = array<i64: 32, 8>}, {pipeline_mode = #tpu.pipeline_mode<synchronous>, transform_indices = @transform_8, window_bounds = array<i64: 1, 8>}, {transform_indices = @transform_9, window_bounds = array<i64: 8, 8>}]} {
    %c0 = arith.constant 0 : index
    %c0_0 = arith.constant 0 : index
    %0 = vector.load %arg3[%c0, %c0_0] : memref<32x128xf32, #tpu.memory_space<vmem>>, vector<32x128xf32>
    %c0_1 = arith.constant 0 : index
    %c0_2 = arith.constant 0 : index
    %1 = vector.load %arg5[%c0_1, %c0_2] : memref<32x128xf32, #tpu.memory_space<vmem>>, vector<32x128xf32>
    %c0_3 = arith.constant 0 : index
    %c0_4 = arith.constant 0 : index
    %2 = vector.load %arg6[%c0_3, %c0_4] : memref<32x128xf32, #tpu.memory_space<vmem>>, vector<32x128xf32>
    %c0_5 = arith.constant 0 : index
    %c0_6 = arith.constant 0 : index
    %3 = vector.load %arg7[%c0_5, %c0_6] : memref<1x128xf32, #tpu.memory_space<vmem>>, vector<1x128xf32>
    %c0_7 = arith.constant 0 : index
    %c0_8 = arith.constant 0 : index
    %c0_9 = arith.constant 0 : index
    %4 = vector.load %arg1[%c0_7, %c0_8, %c0_9] : memref<8x8x32xf32, #tpu.memory_space<vmem>>, vector<8x8x32xf32>
    %5 = vector.shape_cast %4 : vector<8x8x32xf32> to vector<64x32xf32>
    %c0_10 = arith.constant 0 : index
    %c0_11 = arith.constant 0 : index
    %6 = vector.load %arg2[%c0_10, %c0_11] : memref<32x128xf32, #tpu.memory_space<vmem>>, vector<32x128xf32>
    %cst = arith.constant dense<0.000000e+00> : vector<64x128xf32>
    %7 = tpu.matmul %5, %6, %cst {dimension_numbers = #tpu.dot_dimension_numbers<[1], [0], [0], [1], [0, 0, 1, 1], [], []>} : vector<64x32xf32>, vector<32x128xf32>, vector<64x128xf32> -> vector<64x128xf32>
    %c0_12 = arith.constant 0 : index
    %c0_13 = arith.constant 0 : index
    %8 = vector.load %arg4[%c0_12, %c0_13] : memref<1x128xf32, #tpu.memory_space<vmem>>, vector<1x128xf32>
    %9 = vector.broadcast %8 : vector<1x128xf32> to vector<64x128xf32>
    %10 = arith.addf %7, %9 : vector<64x128xf32>
    %11 = vector.shape_cast %10 : vector<64x128xf32> to vector<8x8x128xf32>
    %cst_14 = arith.constant 0.000000e+00 : f32
    %12 = vector.broadcast %cst_14 : f32 to vector<8x32xf32>
    %13 = vector.extract_strided_slice %11 {offsets = [0, 0, 0], sizes = [1, 8, 128], strides = [1, 1, 1]} : vector<8x8x128xf32> to vector<1x8x128xf32>
    %14 = vector.shape_cast %13 : vector<1x8x128xf32> to vector<8x128xf32>
    %15 = vector.extract_strided_slice %14 {offsets = [0, 0], sizes = [8, 96], strides = [1, 1]} : vector<8x128xf32> to vector<8x96xf32>
    %16 = arith.negf %15 : vector<8x96xf32>
    %17 = math.exp %16 : vector<8x96xf32>
    %cst_15 = arith.constant 1.000000e+00 : f32
    %18 = vector.broadcast %cst_15 : f32 to vector<8x96xf32>
    %19 = arith.addf %18, %17 : vector<8x96xf32>
    %20 = arith.divf %18, %19 : vector<8x96xf32>
    %21 = vector.extract_strided_slice %14 {offsets = [0, 96], sizes = [8, 32], strides = [1, 1]} : vector<8x128xf32> to vector<8x32xf32>
    %22 = math.tanh %21 : vector<8x32xf32>
    %23 = vector.extract_strided_slice %20 {offsets = [0, 0], sizes = [8, 32], strides = [1, 1]} : vector<8x96xf32> to vector<8x32xf32>
    %24 = vector.extract_strided_slice %20 {offsets = [0, 32], sizes = [8, 32], strides = [1, 1]} : vector<8x96xf32> to vector<8x32xf32>
    %25 = vector.extract_strided_slice %20 {offsets = [0, 64], sizes = [8, 32], strides = [1, 1]} : vector<8x96xf32> to vector<8x32xf32>
    %26 = arith.mulf %24, %12 : vector<8x32xf32>
    %27 = arith.mulf %23, %22 : vector<8x32xf32>
    %28 = arith.addf %26, %27 : vector<8x32xf32>
    %29 = math.tanh %28 : vector<8x32xf32>
    %30 = arith.mulf %25, %29 : vector<8x32xf32>
    %cst_16 = arith.constant dense<0.000000e+00> : vector<8x128xf32>
    %31 = tpu.matmul %30, %1, %cst_16 {dimension_numbers = #tpu.dot_dimension_numbers<[1], [0], [0], [1], [0, 0, 1, 1], [], []>} : vector<8x32xf32>, vector<32x128xf32>, vector<8x128xf32> -> vector<8x128xf32>
    %32 = vector.broadcast %3 : vector<1x128xf32> to vector<8x128xf32>
    %33 = arith.addf %31, %32 : vector<8x128xf32>
    %cst_17 = arith.constant dense<0.000000e+00> : vector<8x128xf32>
    %34 = tpu.matmul %12, %2, %cst_17 {dimension_numbers = #tpu.dot_dimension_numbers<[1], [0], [0], [1], [0, 0, 1, 1], [], []>} : vector<8x32xf32>, vector<32x128xf32>, vector<8x128xf32> -> vector<8x128xf32>
    %35 = arith.addf %33, %34 : vector<8x128xf32>
    %36 = vector.extract_strided_slice %11 {offsets = [1, 0, 0], sizes = [1, 8, 128], strides = [1, 1, 1]} : vector<8x8x128xf32> to vector<1x8x128xf32>
    %37 = vector.shape_cast %36 : vector<1x8x128xf32> to vector<8x128xf32>
    %cst_18 = arith.constant dense<0.000000e+00> : vector<8x128xf32>
    %38 = tpu.matmul %30, %0, %cst_18 {dimension_numbers = #tpu.dot_dimension_numbers<[1], [0], [0], [1], [0, 0, 1, 1], [], []>} : vector<8x32xf32>, vector<32x128xf32>, vector<8x128xf32> -> vector<8x128xf32>
    %39 = arith.addf %37, %38 : vector<8x128xf32>
    %40 = vector.extract_strided_slice %35 {offsets = [0, 0], sizes = [8, 96], strides = [1, 1]} : vector<8x128xf32> to vector<8x96xf32>
    %41 = arith.negf %40 : vector<8x96xf32>
    %42 = math.exp %41 : vector<8x96xf32>
    %cst_19 = arith.constant 1.000000e+00 : f32
    %43 = vector.broadcast %cst_19 : f32 to vector<8x96xf32>
    %44 = arith.addf %43, %42 : vector<8x96xf32>
    %45 = arith.divf %43, %44 : vector<8x96xf32>
    %46 = vector.extract_strided_slice %35 {offsets = [0, 96], sizes = [8, 32], strides = [1, 1]} : vector<8x128xf32> to vector<8x32xf32>
    %47 = math.tanh %46 : vector<8x32xf32>
    %48 = vector.extract_strided_slice %45 {offsets = [0, 0], sizes = [8, 32], strides = [1, 1]} : vector<8x96xf32> to vector<8x32xf32>
    %49 = vector.extract_strided_slice %45 {offsets = [0, 32], sizes = [8, 32], strides = [1, 1]} : vector<8x96xf32> to vector<8x32xf32>
    %50 = vector.extract_strided_slice %45 {offsets = [0, 64], sizes = [8, 32], strides = [1, 1]} : vector<8x96xf32> to vector<8x32xf32>
    %51 = arith.mulf %49, %12 : vector<8x32xf32>
    %52 = arith.mulf %48, %47 : vector<8x32xf32>
    %53 = arith.addf %51, %52 : vector<8x32xf32>
    %54 = math.tanh %53 : vector<8x32xf32>
    %55 = arith.mulf %50, %54 : vector<8x32xf32>
    %56 = vector.extract_strided_slice %39 {offsets = [0, 0], sizes = [8, 96], strides = [1, 1]} : vector<8x128xf32> to vector<8x96xf32>
    %57 = arith.negf %56 : vector<8x96xf32>
    %58 = math.exp %57 : vector<8x96xf32>
    %cst_20 = arith.constant 1.000000e+00 : f32
    %59 = vector.broadcast %cst_20 : f32 to vector<8x96xf32>
    %60 = arith.addf %59, %58 : vector<8x96xf32>
    %61 = arith.divf %59, %60 : vector<8x96xf32>
    %62 = vector.extract_strided_slice %39 {offsets = [0, 96], sizes = [8, 32], strides = [1, 1]} : vector<8x128xf32> to vector<8x32xf32>
    %63 = math.tanh %62 : vector<8x32xf32>
    %64 = vector.extract_strided_slice %61 {offsets = [0, 0], sizes = [8, 32], strides = [1, 1]} : vector<8x96xf32> to vector<8x32xf32>
    %65 = vector.extract_strided_slice %61 {offsets = [0, 32], sizes = [8, 32], strides = [1, 1]} : vector<8x96xf32> to vector<8x32xf32>
    %66 = vector.extract_strided_slice %61 {offsets = [0, 64], sizes = [8, 32], strides = [1, 1]} : vector<8x96xf32> to vector<8x32xf32>
    %67 = arith.mulf %65, %28 : vector<8x32xf32>
    %68 = arith.mulf %64, %63 : vector<8x32xf32>
    %69 = arith.addf %67, %68 : vector<8x32xf32>
    %70 = math.tanh %69 : vector<8x32xf32>
    %71 = arith.mulf %66, %70 : vector<8x32xf32>
    %72 = arith.addf %12, %55 : vector<8x32xf32>
    %cst_21 = arith.constant dense<0.000000e+00> : vector<8x128xf32>
    %73 = tpu.matmul %71, %1, %cst_21 {dimension_numbers = #tpu.dot_dimension_numbers<[1], [0], [0], [1], [0, 0, 1, 1], [], []>} : vector<8x32xf32>, vector<32x128xf32>, vector<8x128xf32> -> vector<8x128xf32>
    %74 = vector.broadcast %3 : vector<1x128xf32> to vector<8x128xf32>
    %75 = arith.addf %73, %74 : vector<8x128xf32>
    %cst_22 = arith.constant dense<0.000000e+00> : vector<8x128xf32>
    %76 = tpu.matmul %55, %2, %cst_22 {dimension_numbers = #tpu.dot_dimension_numbers<[1], [0], [0], [1], [0, 0, 1, 1], [], []>} : vector<8x32xf32>, vector<32x128xf32>, vector<8x128xf32> -> vector<8x128xf32>
    %77 = arith.addf %75, %76 : vector<8x128xf32>
    %78 = vector.extract_strided_slice %11 {offsets = [2, 0, 0], sizes = [1, 8, 128], strides = [1, 1, 1]} : vector<8x8x128xf32> to vector<1x8x128xf32>
    %79 = vector.shape_cast %78 : vector<1x8x128xf32> to vector<8x128xf32>
    %cst_23 = arith.constant dense<0.000000e+00> : vector<8x128xf32>
    %80 = tpu.matmul %71, %0, %cst_23 {dimension_numbers = #tpu.dot_dimension_numbers<[1], [0], [0], [1], [0, 0, 1, 1], [], []>} : vector<8x32xf32>, vector<32x128xf32>, vector<8x128xf32> -> vector<8x128xf32>
    %81 = arith.addf %79, %80 : vector<8x128xf32>
    %82 = vector.extract_strided_slice %77 {offsets = [0, 0], sizes = [8, 96], strides = [1, 1]} : vector<8x128xf32> to vector<8x96xf32>
    %83 = arith.negf %82 : vector<8x96xf32>
    %84 = math.exp %83 : vector<8x96xf32>
    %cst_24 = arith.constant 1.000000e+00 : f32
    %85 = vector.broadcast %cst_24 : f32 to vector<8x96xf32>
    %86 = arith.addf %85, %84 : vector<8x96xf32>
    %87 = arith.divf %85, %86 : vector<8x96xf32>
    %88 = vector.extract_strided_slice %77 {offsets = [0, 96], sizes = [8, 32], strides = [1, 1]} : vector<8x128xf32> to vector<8x32xf32>
    %89 = math.tanh %88 : vector<8x32xf32>
    %90 = vector.extract_strided_slice %87 {offsets = [0, 0], sizes = [8, 32], strides = [1, 1]} : vector<8x96xf32> to vector<8x32xf32>
    %91 = vector.extract_strided_slice %87 {offsets = [0, 32], sizes = [8, 32], strides = [1, 1]} : vector<8x96xf32> to vector<8x32xf32>
    %92 = vector.extract_strided_slice %87 {offsets = [0, 64], sizes = [8, 32], strides = [1, 1]} : vector<8x96xf32> to vector<8x32xf32>
    %93 = arith.mulf %91, %53 : vector<8x32xf32>
    %94 = arith.mulf %90, %89 : vector<8x32xf32>
    %95 = arith.addf %93, %94 : vector<8x32xf32>
    %96 = math.tanh %95 : vector<8x32xf32>
    %97 = arith.mulf %92, %96 : vector<8x32xf32>
    %98 = vector.extract_strided_slice %81 {offsets = [0, 0], sizes = [8, 96], strides = [1, 1]} : vector<8x128xf32> to vector<8x96xf32>
    %99 = arith.negf %98 : vector<8x96xf32>
    %100 = math.exp %99 : vector<8x96xf32>
    %cst_25 = arith.constant 1.000000e+00 : f32
    %101 = vector.broadcast %cst_25 : f32 to vector<8x96xf32>
    %102 = arith.addf %101, %100 : vector<8x96xf32>
    %103 = arith.divf %101, %102 : vector<8x96xf32>
    %104 = vector.extract_strided_slice %81 {offsets = [0, 96], sizes = [8, 32], strides = [1, 1]} : vector<8x128xf32> to vector<8x32xf32>
    %105 = math.tanh %104 : vector<8x32xf32>
    %106 = vector.extract_strided_slice %103 {offsets = [0, 0], sizes = [8, 32], strides = [1, 1]} : vector<8x96xf32> to vector<8x32xf32>
    %107 = vector.extract_strided_slice %103 {offsets = [0, 32], sizes = [8, 32], strides = [1, 1]} : vector<8x96xf32> to vector<8x32xf32>
    %108 = vector.extract_strided_slice %103 {offsets = [0, 64], sizes = [8, 32], strides = [1, 1]} : vector<8x96xf32> to vector<8x32xf32>
    %109 = arith.mulf %107, %69 : vector<8x32xf32>
    %110 = arith.mulf %106, %105 : vector<8x32xf32>
    %111 = arith.addf %109, %110 : vector<8x32xf32>
    %112 = math.tanh %111 : vector<8x32xf32>
    %113 = arith.mulf %108, %112 : vector<8x32xf32>
    %114 = arith.addf %72, %97 : vector<8x32xf32>
    %cst_26 = arith.constant dense<0.000000e+00> : vector<8x128xf32>
    %115 = tpu.matmul %113, %1, %cst_26 {dimension_numbers = #tpu.dot_dimension_numbers<[1], [0], [0], [1], [0, 0, 1, 1], [], []>} : vector<8x32xf32>, vector<32x128xf32>, vector<8x128xf32> -> vector<8x128xf32>
    %116 = vector.broadcast %3 : vector<1x128xf32> to vector<8x128xf32>
    %117 = arith.addf %115, %116 : vector<8x128xf32>
    %cst_27 = arith.constant dense<0.000000e+00> : vector<8x128xf32>
    %118 = tpu.matmul %97, %2, %cst_27 {dimension_numbers = #tpu.dot_dimension_numbers<[1], [0], [0], [1], [0, 0, 1, 1], [], []>} : vector<8x32xf32>, vector<32x128xf32>, vector<8x128xf32> -> vector<8x128xf32>
    %119 = arith.addf %117, %118 : vector<8x128xf32>
    %120 = vector.extract_strided_slice %11 {offsets = [3, 0, 0], sizes = [1, 8, 128], strides = [1, 1, 1]} : vector<8x8x128xf32> to vector<1x8x128xf32>
    %121 = vector.shape_cast %120 : vector<1x8x128xf32> to vector<8x128xf32>
    %cst_28 = arith.constant dense<0.000000e+00> : vector<8x128xf32>
    %122 = tpu.matmul %113, %0, %cst_28 {dimension_numbers = #tpu.dot_dimension_numbers<[1], [0], [0], [1], [0, 0, 1, 1], [], []>} : vector<8x32xf32>, vector<32x128xf32>, vector<8x128xf32> -> vector<8x128xf32>
    %123 = arith.addf %121, %122 : vector<8x128xf32>
    %124 = vector.extract_strided_slice %119 {offsets = [0, 0], sizes = [8, 96], strides = [1, 1]} : vector<8x128xf32> to vector<8x96xf32>
    %125 = arith.negf %124 : vector<8x96xf32>
    %126 = math.exp %125 : vector<8x96xf32>
    %cst_29 = arith.constant 1.000000e+00 : f32
    %127 = vector.broadcast %cst_29 : f32 to vector<8x96xf32>
    %128 = arith.addf %127, %126 : vector<8x96xf32>
    %129 = arith.divf %127, %128 : vector<8x96xf32>
    %130 = vector.extract_strided_slice %119 {offsets = [0, 96], sizes = [8, 32], strides = [1, 1]} : vector<8x128xf32> to vector<8x32xf32>
    %131 = math.tanh %130 : vector<8x32xf32>
    %132 = vector.extract_strided_slice %129 {offsets = [0, 0], sizes = [8, 32], strides = [1, 1]} : vector<8x96xf32> to vector<8x32xf32>
    %133 = vector.extract_strided_slice %129 {offsets = [0, 32], sizes = [8, 32], strides = [1, 1]} : vector<8x96xf32> to vector<8x32xf32>
    %134 = vector.extract_strided_slice %129 {offsets = [0, 64], sizes = [8, 32], strides = [1, 1]} : vector<8x96xf32> to vector<8x32xf32>
    %135 = arith.mulf %133, %95 : vector<8x32xf32>
    %136 = arith.mulf %132, %131 : vector<8x32xf32>
    %137 = arith.addf %135, %136 : vector<8x32xf32>
    %138 = math.tanh %137 : vector<8x32xf32>
    %139 = arith.mulf %134, %138 : vector<8x32xf32>
    %140 = vector.extract_strided_slice %123 {offsets = [0, 0], sizes = [8, 96], strides = [1, 1]} : vector<8x128xf32> to vector<8x96xf32>
    %141 = arith.negf %140 : vector<8x96xf32>
    %142 = math.exp %141 : vector<8x96xf32>
    %cst_30 = arith.constant 1.000000e+00 : f32
    %143 = vector.broadcast %cst_30 : f32 to vector<8x96xf32>
    %144 = arith.addf %143, %142 : vector<8x96xf32>
    %145 = arith.divf %143, %144 : vector<8x96xf32>
    %146 = vector.extract_strided_slice %123 {offsets = [0, 96], sizes = [8, 32], strides = [1, 1]} : vector<8x128xf32> to vector<8x32xf32>
    %147 = math.tanh %146 : vector<8x32xf32>
    %148 = vector.extract_strided_slice %145 {offsets = [0, 0], sizes = [8, 32], strides = [1, 1]} : vector<8x96xf32> to vector<8x32xf32>
    %149 = vector.extract_strided_slice %145 {offsets = [0, 32], sizes = [8, 32], strides = [1, 1]} : vector<8x96xf32> to vector<8x32xf32>
    %150 = vector.extract_strided_slice %145 {offsets = [0, 64], sizes = [8, 32], strides = [1, 1]} : vector<8x96xf32> to vector<8x32xf32>
    %151 = arith.mulf %149, %111 : vector<8x32xf32>
    %152 = arith.mulf %148, %147 : vector<8x32xf32>
    %153 = arith.addf %151, %152 : vector<8x32xf32>
    %154 = math.tanh %153 : vector<8x32xf32>
    %155 = arith.mulf %150, %154 : vector<8x32xf32>
    %156 = arith.addf %114, %139 : vector<8x32xf32>
    %cst_31 = arith.constant dense<0.000000e+00> : vector<8x128xf32>
    %157 = tpu.matmul %155, %1, %cst_31 {dimension_numbers = #tpu.dot_dimension_numbers<[1], [0], [0], [1], [0, 0, 1, 1], [], []>} : vector<8x32xf32>, vector<32x128xf32>, vector<8x128xf32> -> vector<8x128xf32>
    %158 = vector.broadcast %3 : vector<1x128xf32> to vector<8x128xf32>
    %159 = arith.addf %157, %158 : vector<8x128xf32>
    %cst_32 = arith.constant dense<0.000000e+00> : vector<8x128xf32>
    %160 = tpu.matmul %139, %2, %cst_32 {dimension_numbers = #tpu.dot_dimension_numbers<[1], [0], [0], [1], [0, 0, 1, 1], [], []>} : vector<8x32xf32>, vector<32x128xf32>, vector<8x128xf32> -> vector<8x128xf32>
    %161 = arith.addf %159, %160 : vector<8x128xf32>
    %162 = vector.extract_strided_slice %11 {offsets = [4, 0, 0], sizes = [1, 8, 128], strides = [1, 1, 1]} : vector<8x8x128xf32> to vector<1x8x128xf32>
    %163 = vector.shape_cast %162 : vector<1x8x128xf32> to vector<8x128xf32>
    %cst_33 = arith.constant dense<0.000000e+00> : vector<8x128xf32>
    %164 = tpu.matmul %155, %0, %cst_33 {dimension_numbers = #tpu.dot_dimension_numbers<[1], [0], [0], [1], [0, 0, 1, 1], [], []>} : vector<8x32xf32>, vector<32x128xf32>, vector<8x128xf32> -> vector<8x128xf32>
    %165 = arith.addf %163, %164 : vector<8x128xf32>
    %166 = vector.extract_strided_slice %161 {offsets = [0, 0], sizes = [8, 96], strides = [1, 1]} : vector<8x128xf32> to vector<8x96xf32>
    %167 = arith.negf %166 : vector<8x96xf32>
    %168 = math.exp %167 : vector<8x96xf32>
    %cst_34 = arith.constant 1.000000e+00 : f32
    %169 = vector.broadcast %cst_34 : f32 to vector<8x96xf32>
    %170 = arith.addf %169, %168 : vector<8x96xf32>
    %171 = arith.divf %169, %170 : vector<8x96xf32>
    %172 = vector.extract_strided_slice %161 {offsets = [0, 96], sizes = [8, 32], strides = [1, 1]} : vector<8x128xf32> to vector<8x32xf32>
    %173 = math.tanh %172 : vector<8x32xf32>
    %174 = vector.extract_strided_slice %171 {offsets = [0, 0], sizes = [8, 32], strides = [1, 1]} : vector<8x96xf32> to vector<8x32xf32>
    %175 = vector.extract_strided_slice %171 {offsets = [0, 32], sizes = [8, 32], strides = [1, 1]} : vector<8x96xf32> to vector<8x32xf32>
    %176 = vector.extract_strided_slice %171 {offsets = [0, 64], sizes = [8, 32], strides = [1, 1]} : vector<8x96xf32> to vector<8x32xf32>
    %177 = arith.mulf %175, %137 : vector<8x32xf32>
    %178 = arith.mulf %174, %173 : vector<8x32xf32>
    %179 = arith.addf %177, %178 : vector<8x32xf32>
    %180 = math.tanh %179 : vector<8x32xf32>
    %181 = arith.mulf %176, %180 : vector<8x32xf32>
    %182 = vector.extract_strided_slice %165 {offsets = [0, 0], sizes = [8, 96], strides = [1, 1]} : vector<8x128xf32> to vector<8x96xf32>
    %183 = arith.negf %182 : vector<8x96xf32>
    %184 = math.exp %183 : vector<8x96xf32>
    %cst_35 = arith.constant 1.000000e+00 : f32
    %185 = vector.broadcast %cst_35 : f32 to vector<8x96xf32>
    %186 = arith.addf %185, %184 : vector<8x96xf32>
    %187 = arith.divf %185, %186 : vector<8x96xf32>
    %188 = vector.extract_strided_slice %165 {offsets = [0, 96], sizes = [8, 32], strides = [1, 1]} : vector<8x128xf32> to vector<8x32xf32>
    %189 = math.tanh %188 : vector<8x32xf32>
    %190 = vector.extract_strided_slice %187 {offsets = [0, 0], sizes = [8, 32], strides = [1, 1]} : vector<8x96xf32> to vector<8x32xf32>
    %191 = vector.extract_strided_slice %187 {offsets = [0, 32], sizes = [8, 32], strides = [1, 1]} : vector<8x96xf32> to vector<8x32xf32>
    %192 = vector.extract_strided_slice %187 {offsets = [0, 64], sizes = [8, 32], strides = [1, 1]} : vector<8x96xf32> to vector<8x32xf32>
    %193 = arith.mulf %191, %153 : vector<8x32xf32>
    %194 = arith.mulf %190, %189 : vector<8x32xf32>
    %195 = arith.addf %193, %194 : vector<8x32xf32>
    %196 = math.tanh %195 : vector<8x32xf32>
    %197 = arith.mulf %192, %196 : vector<8x32xf32>
    %198 = arith.addf %156, %181 : vector<8x32xf32>
    %cst_36 = arith.constant dense<0.000000e+00> : vector<8x128xf32>
    %199 = tpu.matmul %197, %1, %cst_36 {dimension_numbers = #tpu.dot_dimension_numbers<[1], [0], [0], [1], [0, 0, 1, 1], [], []>} : vector<8x32xf32>, vector<32x128xf32>, vector<8x128xf32> -> vector<8x128xf32>
    %200 = vector.broadcast %3 : vector<1x128xf32> to vector<8x128xf32>
    %201 = arith.addf %199, %200 : vector<8x128xf32>
    %cst_37 = arith.constant dense<0.000000e+00> : vector<8x128xf32>
    %202 = tpu.matmul %181, %2, %cst_37 {dimension_numbers = #tpu.dot_dimension_numbers<[1], [0], [0], [1], [0, 0, 1, 1], [], []>} : vector<8x32xf32>, vector<32x128xf32>, vector<8x128xf32> -> vector<8x128xf32>
    %203 = arith.addf %201, %202 : vector<8x128xf32>
    %204 = vector.extract_strided_slice %11 {offsets = [5, 0, 0], sizes = [1, 8, 128], strides = [1, 1, 1]} : vector<8x8x128xf32> to vector<1x8x128xf32>
    %205 = vector.shape_cast %204 : vector<1x8x128xf32> to vector<8x128xf32>
    %cst_38 = arith.constant dense<0.000000e+00> : vector<8x128xf32>
    %206 = tpu.matmul %197, %0, %cst_38 {dimension_numbers = #tpu.dot_dimension_numbers<[1], [0], [0], [1], [0, 0, 1, 1], [], []>} : vector<8x32xf32>, vector<32x128xf32>, vector<8x128xf32> -> vector<8x128xf32>
    %207 = arith.addf %205, %206 : vector<8x128xf32>
    %208 = vector.extract_strided_slice %203 {offsets = [0, 0], sizes = [8, 96], strides = [1, 1]} : vector<8x128xf32> to vector<8x96xf32>
    %209 = arith.negf %208 : vector<8x96xf32>
    %210 = math.exp %209 : vector<8x96xf32>
    %cst_39 = arith.constant 1.000000e+00 : f32
    %211 = vector.broadcast %cst_39 : f32 to vector<8x96xf32>
    %212 = arith.addf %211, %210 : vector<8x96xf32>
    %213 = arith.divf %211, %212 : vector<8x96xf32>
    %214 = vector.extract_strided_slice %203 {offsets = [0, 96], sizes = [8, 32], strides = [1, 1]} : vector<8x128xf32> to vector<8x32xf32>
    %215 = math.tanh %214 : vector<8x32xf32>
    %216 = vector.extract_strided_slice %213 {offsets = [0, 0], sizes = [8, 32], strides = [1, 1]} : vector<8x96xf32> to vector<8x32xf32>
    %217 = vector.extract_strided_slice %213 {offsets = [0, 32], sizes = [8, 32], strides = [1, 1]} : vector<8x96xf32> to vector<8x32xf32>
    %218 = vector.extract_strided_slice %213 {offsets = [0, 64], sizes = [8, 32], strides = [1, 1]} : vector<8x96xf32> to vector<8x32xf32>
    %219 = arith.mulf %217, %179 : vector<8x32xf32>
    %220 = arith.mulf %216, %215 : vector<8x32xf32>
    %221 = arith.addf %219, %220 : vector<8x32xf32>
    %222 = math.tanh %221 : vector<8x32xf32>
    %223 = arith.mulf %218, %222 : vector<8x32xf32>
    %224 = vector.extract_strided_slice %207 {offsets = [0, 0], sizes = [8, 96], strides = [1, 1]} : vector<8x128xf32> to vector<8x96xf32>
    %225 = arith.negf %224 : vector<8x96xf32>
    %226 = math.exp %225 : vector<8x96xf32>
    %cst_40 = arith.constant 1.000000e+00 : f32
    %227 = vector.broadcast %cst_40 : f32 to vector<8x96xf32>
    %228 = arith.addf %227, %226 : vector<8x96xf32>
    %229 = arith.divf %227, %228 : vector<8x96xf32>
    %230 = vector.extract_strided_slice %207 {offsets = [0, 96], sizes = [8, 32], strides = [1, 1]} : vector<8x128xf32> to vector<8x32xf32>
    %231 = math.tanh %230 : vector<8x32xf32>
    %232 = vector.extract_strided_slice %229 {offsets = [0, 0], sizes = [8, 32], strides = [1, 1]} : vector<8x96xf32> to vector<8x32xf32>
    %233 = vector.extract_strided_slice %229 {offsets = [0, 32], sizes = [8, 32], strides = [1, 1]} : vector<8x96xf32> to vector<8x32xf32>
    %234 = vector.extract_strided_slice %229 {offsets = [0, 64], sizes = [8, 32], strides = [1, 1]} : vector<8x96xf32> to vector<8x32xf32>
    %235 = arith.mulf %233, %195 : vector<8x32xf32>
    %236 = arith.mulf %232, %231 : vector<8x32xf32>
    %237 = arith.addf %235, %236 : vector<8x32xf32>
    %238 = math.tanh %237 : vector<8x32xf32>
    %239 = arith.mulf %234, %238 : vector<8x32xf32>
    %240 = arith.addf %198, %223 : vector<8x32xf32>
    %cst_41 = arith.constant dense<0.000000e+00> : vector<8x128xf32>
    %241 = tpu.matmul %239, %1, %cst_41 {dimension_numbers = #tpu.dot_dimension_numbers<[1], [0], [0], [1], [0, 0, 1, 1], [], []>} : vector<8x32xf32>, vector<32x128xf32>, vector<8x128xf32> -> vector<8x128xf32>
    %242 = vector.broadcast %3 : vector<1x128xf32> to vector<8x128xf32>
    %243 = arith.addf %241, %242 : vector<8x128xf32>
    %cst_42 = arith.constant dense<0.000000e+00> : vector<8x128xf32>
    %244 = tpu.matmul %223, %2, %cst_42 {dimension_numbers = #tpu.dot_dimension_numbers<[1], [0], [0], [1], [0, 0, 1, 1], [], []>} : vector<8x32xf32>, vector<32x128xf32>, vector<8x128xf32> -> vector<8x128xf32>
    %245 = arith.addf %243, %244 : vector<8x128xf32>
    %246 = vector.extract_strided_slice %11 {offsets = [6, 0, 0], sizes = [1, 8, 128], strides = [1, 1, 1]} : vector<8x8x128xf32> to vector<1x8x128xf32>
    %247 = vector.shape_cast %246 : vector<1x8x128xf32> to vector<8x128xf32>
    %cst_43 = arith.constant dense<0.000000e+00> : vector<8x128xf32>
    %248 = tpu.matmul %239, %0, %cst_43 {dimension_numbers = #tpu.dot_dimension_numbers<[1], [0], [0], [1], [0, 0, 1, 1], [], []>} : vector<8x32xf32>, vector<32x128xf32>, vector<8x128xf32> -> vector<8x128xf32>
    %249 = arith.addf %247, %248 : vector<8x128xf32>
    %250 = vector.extract_strided_slice %245 {offsets = [0, 0], sizes = [8, 96], strides = [1, 1]} : vector<8x128xf32> to vector<8x96xf32>
    %251 = arith.negf %250 : vector<8x96xf32>
    %252 = math.exp %251 : vector<8x96xf32>
    %cst_44 = arith.constant 1.000000e+00 : f32
    %253 = vector.broadcast %cst_44 : f32 to vector<8x96xf32>
    %254 = arith.addf %253, %252 : vector<8x96xf32>
    %255 = arith.divf %253, %254 : vector<8x96xf32>
    %256 = vector.extract_strided_slice %245 {offsets = [0, 96], sizes = [8, 32], strides = [1, 1]} : vector<8x128xf32> to vector<8x32xf32>
    %257 = math.tanh %256 : vector<8x32xf32>
    %258 = vector.extract_strided_slice %255 {offsets = [0, 0], sizes = [8, 32], strides = [1, 1]} : vector<8x96xf32> to vector<8x32xf32>
    %259 = vector.extract_strided_slice %255 {offsets = [0, 32], sizes = [8, 32], strides = [1, 1]} : vector<8x96xf32> to vector<8x32xf32>
    %260 = vector.extract_strided_slice %255 {offsets = [0, 64], sizes = [8, 32], strides = [1, 1]} : vector<8x96xf32> to vector<8x32xf32>
    %261 = arith.mulf %259, %221 : vector<8x32xf32>
    %262 = arith.mulf %258, %257 : vector<8x32xf32>
    %263 = arith.addf %261, %262 : vector<8x32xf32>
    %264 = math.tanh %263 : vector<8x32xf32>
    %265 = arith.mulf %260, %264 : vector<8x32xf32>
    %266 = vector.extract_strided_slice %249 {offsets = [0, 0], sizes = [8, 96], strides = [1, 1]} : vector<8x128xf32> to vector<8x96xf32>
    %267 = arith.negf %266 : vector<8x96xf32>
    %268 = math.exp %267 : vector<8x96xf32>
    %cst_45 = arith.constant 1.000000e+00 : f32
    %269 = vector.broadcast %cst_45 : f32 to vector<8x96xf32>
    %270 = arith.addf %269, %268 : vector<8x96xf32>
    %271 = arith.divf %269, %270 : vector<8x96xf32>
    %272 = vector.extract_strided_slice %249 {offsets = [0, 96], sizes = [8, 32], strides = [1, 1]} : vector<8x128xf32> to vector<8x32xf32>
    %273 = math.tanh %272 : vector<8x32xf32>
    %274 = vector.extract_strided_slice %271 {offsets = [0, 0], sizes = [8, 32], strides = [1, 1]} : vector<8x96xf32> to vector<8x32xf32>
    %275 = vector.extract_strided_slice %271 {offsets = [0, 32], sizes = [8, 32], strides = [1, 1]} : vector<8x96xf32> to vector<8x32xf32>
    %276 = vector.extract_strided_slice %271 {offsets = [0, 64], sizes = [8, 32], strides = [1, 1]} : vector<8x96xf32> to vector<8x32xf32>
    %277 = arith.mulf %275, %237 : vector<8x32xf32>
    %278 = arith.mulf %274, %273 : vector<8x32xf32>
    %279 = arith.addf %277, %278 : vector<8x32xf32>
    %280 = math.tanh %279 : vector<8x32xf32>
    %281 = arith.mulf %276, %280 : vector<8x32xf32>
    %282 = arith.addf %240, %265 : vector<8x32xf32>
    %cst_46 = arith.constant dense<0.000000e+00> : vector<8x128xf32>
    %283 = tpu.matmul %281, %1, %cst_46 {dimension_numbers = #tpu.dot_dimension_numbers<[1], [0], [0], [1], [0, 0, 1, 1], [], []>} : vector<8x32xf32>, vector<32x128xf32>, vector<8x128xf32> -> vector<8x128xf32>
    %284 = vector.broadcast %3 : vector<1x128xf32> to vector<8x128xf32>
    %285 = arith.addf %283, %284 : vector<8x128xf32>
    %cst_47 = arith.constant dense<0.000000e+00> : vector<8x128xf32>
    %286 = tpu.matmul %265, %2, %cst_47 {dimension_numbers = #tpu.dot_dimension_numbers<[1], [0], [0], [1], [0, 0, 1, 1], [], []>} : vector<8x32xf32>, vector<32x128xf32>, vector<8x128xf32> -> vector<8x128xf32>
    %287 = arith.addf %285, %286 : vector<8x128xf32>
    %288 = vector.extract_strided_slice %11 {offsets = [7, 0, 0], sizes = [1, 8, 128], strides = [1, 1, 1]} : vector<8x8x128xf32> to vector<1x8x128xf32>
    %289 = vector.shape_cast %288 : vector<1x8x128xf32> to vector<8x128xf32>
    %cst_48 = arith.constant dense<0.000000e+00> : vector<8x128xf32>
    %290 = tpu.matmul %281, %0, %cst_48 {dimension_numbers = #tpu.dot_dimension_numbers<[1], [0], [0], [1], [0, 0, 1, 1], [], []>} : vector<8x32xf32>, vector<32x128xf32>, vector<8x128xf32> -> vector<8x128xf32>
    %291 = arith.addf %289, %290 : vector<8x128xf32>
    %292 = vector.extract_strided_slice %287 {offsets = [0, 0], sizes = [8, 96], strides = [1, 1]} : vector<8x128xf32> to vector<8x96xf32>
    %293 = arith.negf %292 : vector<8x96xf32>
    %294 = math.exp %293 : vector<8x96xf32>
    %cst_49 = arith.constant 1.000000e+00 : f32
    %295 = vector.broadcast %cst_49 : f32 to vector<8x96xf32>
    %296 = arith.addf %295, %294 : vector<8x96xf32>
    %297 = arith.divf %295, %296 : vector<8x96xf32>
    %298 = vector.extract_strided_slice %287 {offsets = [0, 96], sizes = [8, 32], strides = [1, 1]} : vector<8x128xf32> to vector<8x32xf32>
    %299 = math.tanh %298 : vector<8x32xf32>
    %300 = vector.extract_strided_slice %297 {offsets = [0, 0], sizes = [8, 32], strides = [1, 1]} : vector<8x96xf32> to vector<8x32xf32>
    %301 = vector.extract_strided_slice %297 {offsets = [0, 32], sizes = [8, 32], strides = [1, 1]} : vector<8x96xf32> to vector<8x32xf32>
    %302 = vector.extract_strided_slice %297 {offsets = [0, 64], sizes = [8, 32], strides = [1, 1]} : vector<8x96xf32> to vector<8x32xf32>
    %303 = arith.mulf %301, %263 : vector<8x32xf32>
    %304 = arith.mulf %300, %299 : vector<8x32xf32>
    %305 = arith.addf %303, %304 : vector<8x32xf32>
    %306 = math.tanh %305 : vector<8x32xf32>
    %307 = arith.mulf %302, %306 : vector<8x32xf32>
    %308 = vector.extract_strided_slice %291 {offsets = [0, 0], sizes = [8, 96], strides = [1, 1]} : vector<8x128xf32> to vector<8x96xf32>
    %309 = arith.negf %308 : vector<8x96xf32>
    %310 = math.exp %309 : vector<8x96xf32>
    %cst_50 = arith.constant 1.000000e+00 : f32
    %311 = vector.broadcast %cst_50 : f32 to vector<8x96xf32>
    %312 = arith.addf %311, %310 : vector<8x96xf32>
    %313 = arith.divf %311, %312 : vector<8x96xf32>
    %314 = vector.extract_strided_slice %291 {offsets = [0, 96], sizes = [8, 32], strides = [1, 1]} : vector<8x128xf32> to vector<8x32xf32>
    %315 = math.tanh %314 : vector<8x32xf32>
    %316 = vector.extract_strided_slice %313 {offsets = [0, 0], sizes = [8, 32], strides = [1, 1]} : vector<8x96xf32> to vector<8x32xf32>
    %317 = vector.extract_strided_slice %313 {offsets = [0, 32], sizes = [8, 32], strides = [1, 1]} : vector<8x96xf32> to vector<8x32xf32>
    %318 = vector.extract_strided_slice %313 {offsets = [0, 64], sizes = [8, 32], strides = [1, 1]} : vector<8x96xf32> to vector<8x32xf32>
    %319 = arith.mulf %317, %279 : vector<8x32xf32>
    %320 = arith.mulf %316, %315 : vector<8x32xf32>
    %321 = arith.addf %319, %320 : vector<8x32xf32>
    %322 = math.tanh %321 : vector<8x32xf32>
    %323 = arith.mulf %318, %322 : vector<8x32xf32>
    %324 = arith.addf %282, %307 : vector<8x32xf32>
    %cst_51 = arith.constant dense<0.000000e+00> : vector<8x128xf32>
    %325 = tpu.matmul %323, %1, %cst_51 {dimension_numbers = #tpu.dot_dimension_numbers<[1], [0], [0], [1], [0, 0, 1, 1], [], []>} : vector<8x32xf32>, vector<32x128xf32>, vector<8x128xf32> -> vector<8x128xf32>
    %326 = vector.broadcast %3 : vector<1x128xf32> to vector<8x128xf32>
    %327 = arith.addf %325, %326 : vector<8x128xf32>
    %cst_52 = arith.constant dense<0.000000e+00> : vector<8x128xf32>
    %328 = tpu.matmul %307, %2, %cst_52 {dimension_numbers = #tpu.dot_dimension_numbers<[1], [0], [0], [1], [0, 0, 1, 1], [], []>} : vector<8x32xf32>, vector<32x128xf32>, vector<8x128xf32> -> vector<8x128xf32>
    %329 = arith.addf %327, %328 : vector<8x128xf32>
    %330 = vector.extract_strided_slice %329 {offsets = [0, 0], sizes = [8, 96], strides = [1, 1]} : vector<8x128xf32> to vector<8x96xf32>
    %331 = arith.negf %330 : vector<8x96xf32>
    %332 = math.exp %331 : vector<8x96xf32>
    %cst_53 = arith.constant 1.000000e+00 : f32
    %333 = vector.broadcast %cst_53 : f32 to vector<8x96xf32>
    %334 = arith.addf %333, %332 : vector<8x96xf32>
    %335 = arith.divf %333, %334 : vector<8x96xf32>
    %336 = vector.extract_strided_slice %329 {offsets = [0, 96], sizes = [8, 32], strides = [1, 1]} : vector<8x128xf32> to vector<8x32xf32>
    %337 = math.tanh %336 : vector<8x32xf32>
    %338 = vector.extract_strided_slice %335 {offsets = [0, 0], sizes = [8, 32], strides = [1, 1]} : vector<8x96xf32> to vector<8x32xf32>
    %339 = vector.extract_strided_slice %335 {offsets = [0, 32], sizes = [8, 32], strides = [1, 1]} : vector<8x96xf32> to vector<8x32xf32>
    %340 = vector.extract_strided_slice %335 {offsets = [0, 64], sizes = [8, 32], strides = [1, 1]} : vector<8x96xf32> to vector<8x32xf32>
    %341 = arith.mulf %339, %305 : vector<8x32xf32>
    %342 = arith.mulf %338, %337 : vector<8x32xf32>
    %343 = arith.addf %341, %342 : vector<8x32xf32>
    %344 = math.tanh %343 : vector<8x32xf32>
    %345 = arith.mulf %340, %344 : vector<8x32xf32>
    %346 = arith.addf %324, %345 : vector<8x32xf32>
    %c0_54 = arith.constant 0 : index
    %c0_55 = arith.constant 0 : index
    %347 = vector.load %arg8[%c0_54, %c0_55] : memref<32x8xf32, #tpu.memory_space<vmem>>, vector<32x8xf32>
    %cst_56 = arith.constant dense<0.000000e+00> : vector<8x8xf32>
    %348 = tpu.matmul %346, %347, %cst_56 {dimension_numbers = #tpu.dot_dimension_numbers<[1], [0], [0], [1], [0, 0, 1, 1], [], []>} : vector<8x32xf32>, vector<32x8xf32>, vector<8x8xf32> -> vector<8x8xf32>
    %c0_57 = arith.constant 0 : index
    %c0_58 = arith.constant 0 : index
    %349 = vector.load %arg9[%c0_57, %c0_58] : memref<1x8xf32, #tpu.memory_space<vmem>>, vector<1x8xf32>
    %350 = vector.broadcast %349 : vector<1x8xf32> to vector<8x8xf32>
    %351 = arith.addf %348, %350 : vector<8x8xf32>
    %352 = arith.negf %351 : vector<8x8xf32>
    %353 = math.exp %352 : vector<8x8xf32>
    %cst_59 = arith.constant 1.000000e+00 : f32
    %354 = vector.broadcast %cst_59 : f32 to vector<8x8xf32>
    %355 = arith.addf %354, %353 : vector<8x8xf32>
    %356 = arith.divf %354, %355 : vector<8x8xf32>
    %c0_60 = arith.constant 0 : index
    %c0_61 = arith.constant 0 : index
    %357 = vector.load %arg10[%c0_60, %c0_61] : memref<8x8xf32, #tpu.memory_space<vmem>>, vector<8x8xf32>
    tpu.vector_store %arg10[%c0_60, %c0_61], %356 {strides = array<i32>} : memref<8x8xf32, #tpu.memory_space<vmem>>, vector<8x8xf32>,
    return
  }
  func.func @transform_0(%arg0: i32) -> (i32, i32, i32) {
    %c0_i32 = arith.constant 0 : i32
    %c0_i32_0 = arith.constant 0 : i32
    %c0_i32_1 = arith.constant 0 : i32
    return %c0_i32, %arg0, %c0_i32_0 : i32, i32, i32
  }
  func.func @transform_1(%arg0: i32) -> (i32, i32) {
    %c0_i32 = arith.constant 0 : i32
    %c0_i32_0 = arith.constant 0 : i32
    %c0_i32_1 = arith.constant 0 : i32
    return %c0_i32, %c0_i32_0 : i32, i32
  }
  func.func @transform_2(%arg0: i32) -> (i32, i32) {
    %c0_i32 = arith.constant 0 : i32
    %c0_i32_0 = arith.constant 0 : i32
    %c0_i32_1 = arith.constant 0 : i32
    return %c0_i32, %c0_i32_0 : i32, i32
  }
  func.func @transform_3(%arg0: i32) -> (i32, i32) {
    %c0_i32 = arith.constant 0 : i32
    %c0_i32_0 = arith.constant 0 : i32
    %c0_i32_1 = arith.constant 0 : i32
    return %c0_i32, %c0_i32_0 : i32, i32
  }
  func.func @transform_4(%arg0: i32) -> (i32, i32) {
    %c0_i32 = arith.constant 0 : i32
    %c0_i32_0 = arith.constant 0 : i32
    %c0_i32_1 = arith.constant 0 : i32
    return %c0_i32, %c0_i32_0 : i32, i32
  }
  func.func @transform_5(%arg0: i32) -> (i32, i32) {
    %c0_i32 = arith.constant 0 : i32
    %c0_i32_0 = arith.constant 0 : i32
    %c0_i32_1 = arith.constant 0 : i32
    return %c0_i32, %c0_i32_0 : i32, i32
  }
  func.func @transform_6(%arg0: i32) -> (i32, i32) {
    %c0_i32 = arith.constant 0 : i32
    %c0_i32_0 = arith.constant 0 : i32
    %c0_i32_1 = arith.constant 0 : i32
    return %c0_i32, %c0_i32_0 : i32, i32
  }
  func.func @transform_7(%arg0: i32) -> (i32, i32) {
    %c0_i32 = arith.constant 0 : i32
    %c0_i32_0 = arith.constant 0 : i32
    %c0_i32_1 = arith.constant 0 : i32
    return %c0_i32, %c0_i32_0 : i32, i32
  }
  func.func @transform_8(%arg0: i32) -> (i32, i32) {
    %c0_i32 = arith.constant 0 : i32
    %c0_i32_0 = arith.constant 0 : i32
    %c0_i32_1 = arith.constant 0 : i32
    return %c0_i32, %c0_i32_0 : i32, i32
  }
  func.func @transform_9(%arg0: i32) -> (i32, i32) {
    %c0_i32 = arith.constant 0 : i32
    %c0_i32_0 = arith.constant 0 : i32
    return %arg0, %c0_i32 : i32, i32
  }
}

</mosaic_0001>

<bundles_post_ra>
// kernel: tpu_custom_call.1
= control target key start
LH: loop header
LB: loop body
LE: loop exit
PB: predicated region body
PF: predicated region fallthrough
CT: control target
= control target key end

     0   :  { %14 = vsyncpa [#allocation3], 0  ;;  %s3914_s0 = inlined_call_operand.hbm [shape: f32[8,8,32], index: 0, kind: input, shape index: {}]   ;;  %s3915_s1 = inlined_call_operand.vmem [shape: f32[32,128], index: 1, kind: input, shape index: {}]   ;;  %s3916_s2 = inlined_call_operand.hbm [shape: f32[32,128], index: 2, kind: input, shape index: {}]   ;;  %s3917_s3 = inlined_call_operand.vmem [shape: f32[1,128], index: 3, kind: input, shape index: {}]   ;;  %s3918_s4 = inlined_call_operand.hbm [shape: f32[32,128], index: 4, kind: input, shape index: {}]   ;;  %s3919_s5 = inlined_call_operand.hbm [shape: f32[32,128], index: 5, kind: input, shape index: {}]   ;;  %s3920_s6 = inlined_call_operand.vmem [shape: f32[1,128], index: 6, kind: input, shape index: {}]   ;;  %s3921_s7 = inlined_call_operand.vmem [shape: f32[32,8], index: 7, kind: input, shape index: {}]   ;;  %s3922_s8 = inlined_call_operand.vmem [shape: f32[1,8], index: 8, kind: input, shape index: {}]   ;;  %s3923_s9 = inlined_call_operand.hbm [shape: f32[8,8], index: 9, kind: output, shape index: {}]  }
   0x1   :  { %15 = vsyncpa [#allocation6], 0 }
   0x2   :  { %16 = vsyncpa [#allocation9], 0 }
   0x3   :  { %17 = vsyncpa [#allocation4], 0  ;;  %s3368_s30 = smov [#allocation5]   ;;  %s3369_s11 = smov [#allocation2]  }
   0x4   :  { %s37_s10 = sshll.u32 %s3368_s30, 4  ;;  %s23_s12 = sshll.u32 %s3369_s11, 4  ;;  %s38_s10 = int_to_ptr.vmem [resolvable:$true] %s37_s10  ;;  %s3430_s12 = int_to_ptr.vmem [resolvable:$true] %s23_s12 }
   0x5   :  { %s3250_s15 = scalar_lea.hbm %s3916_s2, 512 }
   0x6   :  { %p3251_p0 = scmp.ne.s32.totalorder %s3916_s2, %s3250_s15  ;;  %p3254_p1 = scmp.lt.u32.totalorder %s3250_s15, %s3916_s2 }
   0x8   :  { %p3256_p2 = pnand %p3254_p1, %p3251_p0 }
   0xa   :  { %3259 = shalt.err (!%p3256_p2)
}
   0xb   :  { %s3260_s20 = scalar_lea.vmem %s38_s10, 512  ;;  %p3265_p4 = scmp.lt.s32.totalorder %s38_s10, %s38_s10 }
   0xc   :  { %p3261_p3 = scmp.ne.s32.totalorder %s38_s10, %s3260_s20  ;;  %p3266_p5 = scmp.lt.s32.totalorder %s3260_s20, %s3260_s20 }
   0xe   :  { %p3267_p6 = por %p3266_p5, %p3265_p4 }
  0x10   :  { %p3268_p7 = pnand %p3267_p6, %p3261_p3 }
  0x12   :  { %3271 = shalt.err (!%p3268_p7)
}
  0x13   :  { %s3370_s21 = smov 128   ;;  %s3371_s22 = smov 8  }
  0x14   :  { %43 = dma.hbm_to_vmem [thread:$0]  %s3916_s2, 512, %s38_s10, [#allocation6], %s3370_s21, %s3370_s21, %s3371_s22  }
  0x15   :  { %s3272_s27 = scalar_lea.hbm %s3914_s0, 1024 }
  0x16   :  { %p3273_p8 = scmp.ne.s32.totalorder %s3914_s0, %s3272_s27  ;;  %p3276_p9 = scmp.lt.u32.totalorder %s3272_s27, %s3914_s0 }
  0x18   :  { %p3278_p10 = pnand %p3276_p9, %p3273_p8 }
  0x1a   :  { %3281 = shalt.err (!%p3278_p10)
}
  0x1b   :  { %s3282_s13 = scalar_lea.vmem %s3430_s12, 1024  ;;  %p3287_p12 = scmp.lt.s32.totalorder %s3430_s12, %s3430_s12 }
  0x1c   :  { %p3283_p11 = scmp.ne.s32.totalorder %s3430_s12, %s3282_s13  ;;  %p3288_p13 = scmp.lt.s32.totalorder %s3282_s13, %s3282_s13 }
  0x1e   :  { %p3289_p0 = por %p3288_p13, %p3287_p12 }
  0x20   :  { %p3290_p1 = pnand %p3289_p0, %p3283_p11 }
  0x22   :  { %3293 = shalt.err (!%p3290_p1)
}
  0x23   :  { %29 = dma.hbm_to_vmem [thread:$0]  %s3914_s0, 1024, %s3430_s12, [#allocation3], %s3370_s21, %s3370_s21, %s3371_s22  }
  0x24   :  { %s3372_s14 = smov [#allocation7]   ;;  %s3373_s16 = smov [#allocation8]  }
  0x25   :  { %s51_s15 = sshll.u32 %s3372_s14, 4  ;;  %s63_s17 = sshll.u32 %s3373_s16, 4  ;;  %s52_s15 = int_to_ptr.vmem [resolvable:$true] %s51_s15  ;;  %s3467_s17 = int_to_ptr.vmem [resolvable:$true] %s63_s17 }
  0x26   :  { %s3294_s20 = scalar_lea.hbm %s3918_s4, 512 }
  0x27   :  { %p3295_p2 = scmp.ne.s32.totalorder %s3918_s4, %s3294_s20  ;;  %p3298_p3 = scmp.lt.u32.totalorder %s3294_s20, %s3918_s4 }
  0x29   :  { %p3300_p4 = pnand %p3298_p3, %p3295_p2 }
  0x2b   :  { %3303 = shalt.err (!%p3300_p4)
}
  0x2c   :  { %s3304_s0 = scalar_lea.vmem %s52_s15, 512  ;;  %p3309_p6 = scmp.lt.s32.totalorder %s52_s15, %s52_s15 }
  0x2d   :  { %p3305_p5 = scmp.ne.s32.totalorder %s52_s15, %s3304_s0  ;;  %p3310_p7 = scmp.lt.s32.totalorder %s3304_s0, %s3304_s0 }
  0x2f   :  { %p3311_p8 = por %p3310_p7, %p3309_p6 }
  0x31   :  { %p3312_p9 = pnand %p3311_p8, %p3305_p5 }
  0x33   :  { %3315 = shalt.err (!%p3312_p9)
}
  0x34   :  { %57 = dma.hbm_to_vmem [thread:$0]  %s3918_s4, 512, %s52_s15, [#allocation6], %s3370_s21, %s3370_s21, %s3371_s22  }
  0x35   :  { %s3316_s30 = scalar_lea.hbm %s3919_s5, 512 }
  0x36   :  { %p3317_p10 = scmp.ne.s32.totalorder %s3919_s5, %s3316_s30  ;;  %p3320_p11 = scmp.lt.u32.totalorder %s3316_s30, %s3919_s5 }
  0x38   :  { %p3322_p12 = pnand %p3320_p11, %p3317_p10 }
  0x3a   :  { %3325 = shalt.err (!%p3322_p12)
}
  0x3b   :  { %s3326_s14 = scalar_lea.vmem %s3467_s17, 512  ;;  %p3331_p0 = scmp.lt.s32.totalorder %s3467_s17, %s3467_s17 }
  0x3c   :  { %p3327_p13 = scmp.ne.s32.totalorder %s3467_s17, %s3326_s14  ;;  %p3332_p1 = scmp.lt.s32.totalorder %s3326_s14, %s3326_s14 }
  0x3e   :  { %p3333_p2 = por %p3332_p1, %p3331_p0 }
  0x40   :  { %p3334_p3 = pnand %p3333_p2, %p3327_p13 }
  0x42   :  { %3337 = shalt.err (!%p3334_p3)
}
  0x43   :  { %69 = dma.hbm_to_vmem [thread:$0]  %s3919_s5, 512, %s3467_s17, [#allocation9], %s3370_s21, %s3370_s21, %s3371_s22  }
  0x44   :  { %3360 = dma.done.wait [#allocation3], 1024  }
  0x45   :  { %3361 = vsyncadd [#allocation3], 4294966272 }
  0x46   :  { %3362 = dma.done.wait [#allocation6], 1024  }
  0x47   :  { %3363 = vsyncadd [#allocation6], 4294966272 }
  0x48   :  { %3364 = dma.done.wait [#allocation9], 512  }
  0x49   :  { %3365 = vsyncadd [#allocation9], 4294966784  ;;  %vm120_vm0 = vcmask 261120   ;;  %v109_v0 = vld [vmem:[%s3915_s1] sm:$0xff]  ;;  %v110_v1 = vld [vmem:[%s3915_s1 + $0x8] sm:$0xff]  ;;  %v3375_v25 = vmov 0.0|0.0  }
  0x4a   :  { %v111_v2 = vld [vmem:[%s3915_s1 + $0x10] sm:$0xff]  ;;  %v2929_v3 = vpack.c.bf16 %v110_v1, %v109_v0  ;;  %v112_v4 = vld [vmem:[%s3915_s1 + $0x18] sm:$0xff]  ;;  %v101_v5 = vld [vmem:[#allocation2] sm:$0xff]  ;;  %s3374_s1 = smov 32   ;;  %2937 = vmatprep.subr.bf16.mxu1 %v3375_v25  ;;  %vm3376_vm1 = vmmov 0   ;;  %v3377_v39 = vmov 0.0  }
  0x4b   :  { %v2933_v6 = vpack.c.bf16 %v112_v4, %v111_v2  ;;  %2653 = vmatprep.mubr.msk.f32.mxu0 %vm120_vm0, %v101_v5  ;;  %v102_v7 = vld [vmem:[#allocation2 + $0x8] sm:$0xff]  ;;  %v3521_v8 = vld [vmem:[%s3917_s3] ss:$0 sm:$0xff]  ;;  %v103_v24 = vld [vmem:[#allocation2 + $0x10] sm:$0xff]  ;;  %2673 = vmatprep.mubr.msk.f32.mxu1 %vm3376_vm1, %v3377_v39  ;;  %s3378_s25 = smov 64   ;;  %vm2443_vm2 = vcmask 64512  }
  0x4c   :  { %2930 = vmatprep.subr.bf16.mxu0 %v2929_v3  ;;  %v88_v22 = vld [vmem:[#allocation5] sm:$0xff]  ;;  %v89_v23 = vld [vmem:[#allocation5 + $0x8] sm:$0xff]  ;;  %v104_v27 = vld [vmem:[#allocation2 + $0x18] sm:$0xff] }
  0x4d   :  { %2932 = vmatpush3.bf16.msra.mxu0 %v2929_v3  ;;  %v3532_v26 = vpack.c.bf16 %v89_v23, %v88_v22  ;;  %v105_v28 = vld [vmem:[#allocation2 + $0x20] sm:$0xff]  ;;  %v93_v30 = vld [vmem:[#allocation7 + $0x8] sm:$0xff]  ;;  %v90_v31 = vld [vmem:[#allocation5 + $0x10] sm:$0xff] }
  0x4e   :  { %2934 = vmatprep.subr.bf16.mxu0 %v2933_v6  ;;  %v92_v29 = vld [vmem:[#allocation7] sm:$0xff]  ;;  %v106_v32 = vld [vmem:[#allocation2 + $0x28] sm:$0xff]  ;;  %v91_v34 = vld [vmem:[#allocation5 + $0x18] sm:$0xff] }
  0x4f   :  { %v3539_v33 = vpack.c.bf16 %v93_v30, %v92_v29  ;;  %v3542_v35 = vpack.c.bf16 %v91_v34, %v90_v31  ;;  %v107_v36 = vld [vmem:[#allocation2 + $0x30] sm:$0xff]  ;;  %v95_v38 = vld [vmem:[#allocation7 + $0x18] sm:$0xff]  ;;  %v96_v51 = vld [vmem:[#allocation8] sm:$0xff] }
  0x50   :  { %v94_v37 = vld [vmem:[#allocation7 + $0x10] sm:$0xff]  ;;  %v108_v41 = vld [vmem:[#allocation2 + $0x38] sm:$0xff]  ;;  %v97_v52 = vld [vmem:[#allocation8 + $0x8] sm:$0xff] }
  0x51   :  { %2936 = vmatpush3.bf16.msra.mxu0 %v2933_v6  ;;  %2939 = vmatpush3.bf16.msra.mxu1 %v3539_v33  ;;  %v3547_v40 = vpack.c.bf16 %v95_v38, %v94_v37  ;;  %v3573_v53 = vpack.c.bf16 %v97_v52, %v96_v51  ;;  %v98_v54 = vld [vmem:[#allocation8 + $0x10] sm:$0xff]  ;;  %v99_v55 = vld [vmem:[#allocation8 + $0x18] sm:$0xff]  ;;  %v3603_v62 = vld [vmem:[%s3920_s6] ss:$0 sm:$0xff] }
  0x52   :  { %2949 = vmatprep.subr.bf16.mxu0 %v3375_v25  ;;  %2940 = vmatprep.subr.bf16.mxu1 %v3375_v25  ;;  %v3578_v57 = vpack.c.bf16 %v99_v55, %v98_v54 }
  0x54   :  { %2654 = vmatmul.mubr.msk.f32.vlgmr.msra.gmra.mrb[0].mxu0 %vm120_vm0, %v102_v7 }
  0x55   :  { %2656 = vmatprep.mubr.msk.f32.mxu0 %vm120_vm0, %v103_v24  ;;  %2951 = vmatpush3.bf16.msra.mxu0 %v3532_v26 }
  0x56   :  { %2952 = vmatprep.subr.bf16.mxu0 %v3375_v25  ;;  %2942 = vmatpush3.bf16.msra.mxu1 %v3547_v40 }
  0x57   :  { %2943 = vmatprep.subr.bf16.mxu1 %v3375_v25 }
  0x58   :  { %2657 = vmatmul.mubr.msk.f32.gmra.mrb[2].mxu0 %vm120_vm0, %v104_v27 }
  0x59   :  { %2659 = vmatprep.mubr.msk.f32.mxu0 %vm120_vm0, %v105_v28  ;;  %2954 = vmatpush3.bf16.msra.mxu0 %v3542_v35 }
  0x5a   :  { %2967 = vmatprep.subr.bf16.mxu0 %v3375_v25 }
  0x5c   :  { %2660 = vmatmul.mubr.msk.f32.gmra.mrb[4].mxu0 %vm120_vm0, %v106_v32 }
  0x5d   :  { %2662 = vmatprep.mubr.msk.f32.mxu0 %vm120_vm0, %v107_v36 }
  0x60   :  { %2663 = vmatmul.mubr.msk.f32.gmra.mrb[6].mxu0 %vm120_vm0, %v108_v41 }
  0x61   :  { %2695 = vmatprep.mubr.msk.f32.mxu0 %vm3376_vm1, %v3377_v39 }
 0x127   :  { %v3523_v9 = vpop.f32.mrb[0].mxu0 }
 0x128   :  { %v211_v10 = vpop.f32.mrb[1].mxu0  ;;  %v217_v58 = vadd.f32 %v3523_v9, %v3521_v8 }
 0x129   :  { %v212_v11 = vadd.f32 %v3521_v8, %v211_v10 }
 0x12b   :  { %3117 = vtanh.f32 %v212_v11  ;;  %v2471_v13 = vmul.f32 -1.442695, %v212_v11  ;;  %v3561_v45 = vpop.f32.mrb[2].mxu0 }
 0x12c   :  { %v3563_v46 = vpop.f32.mrb[3].mxu0 }
 0x12d   :  { %3119 = vpow2.f32 %v2471_v13  ;;  %v222_v34 = vadd.f32 %v3521_v8, %v3563_v46 }
 0x12f   :  { %v3565_v47 = vpop.f32.mrb[4].mxu0 }
 0x130   :  { %v3567_v48 = vpop.f32.mrb[5].mxu0 }
 0x133   :  { %v3569_v49 = vpop.f32.mrb[6].mxu0 }
 0x134   :  { %v3571_v50 = vpop.f32.mrb[7].mxu0 }
 0x135   :  { %v3118_v12 = vpop.eup %3117 }
 0x136   :  { %259 = vrot.lane.b32.xlu0 %v3118_v12, %s3374_s1 }
 0x137   :  { %v3120_v14 = vpop.eup %3119 }
 0x138   :  { %v253_v15 = vadd.f32 1.0, %v3120_v14 }
 0x13a   :  { %3121 = vrcp.f32 %v253_v15 }
 0x144   :  { %v3122_v16 = vpop.eup %3121 }
 0x145   :  { %v257_v19 = vmul.f32 0.0, %v3122_v16 }
 0x1a8   :  { %v260_v17 = vpop.permute.xlu0 %259 }
 0x1a9   :  { %v262_v18 = vmul.f32 %v3122_v16, %v260_v17 }
 0x1ab   :  { %264 = vrot.lane.b32.xlu0 %v262_v18, %s3374_s1 }
 0x21d   :  { %v265_v20 = vpop.permute.xlu0 %264 }
 0x21e   :  { %v3528_v21 = vadd.f32 %v265_v20, %v257_v19 }
 0x220   :  { %3123 = vtanh.f32 %v3528_v21 }
 0x22a   :  { %v3124_v42 = vpop.eup %3123 }
 0x22b   :  { %270 = vrot.lane.b32.xlu1 %v3124_v42, %s3374_s1 }
 0x29d   :  { %v271_v43 = vpop.permute.xlu1 %270 }
 0x29e   :  { %v273_v44 = vmul.f32 %v3122_v16, %v271_v43 }
 0x2a0   :  { %281 = vrot.lane.b32.xlu1 %v273_v44, %s3378_s25 }
 0x312   :  { %v282_v56 = vpop.permute.xlu1 %281 }
 0x313   :  { %2674 = vmatmul.mubr.msk.f32.vlgmr.msra.gmra.mrb[0].mxu1 %vm120_vm0, %v282_v56  ;;  %2696 = vmatmul.mubr.msk.f32.vlgmr.msra.gmra.mrb[8].mxu0 %vm120_vm0, %v282_v56 }
 0x314   :  { %2945 = vmatpush3.bf16.msra.mxu1 %v3573_v53  ;;  %2684 = vmatprep.mubr.msk.f32.mxu1 %vm3376_vm1, %v3377_v39 }
 0x315   :  { %2946 = vmatprep.subr.bf16.mxu1 %v3375_v25  ;;  %2969 = vmatpush3.bf16.msra.mxu0 %v3532_v26 }
 0x316   :  { %2970 = vmatprep.subr.bf16.mxu0 %v3375_v25  ;;  %2728 = vmatprep.mubr.msk.f32.mxu0 %vm3376_vm1, %v3377_v39 }
 0x318   :  { %2948 = vmatpush3.bf16.msra.mxu1 %v3578_v57 }
 0x319   :  { %2955 = vmatprep.subr.bf16.mxu1 %v3375_v25  ;;  %2972 = vmatpush3.bf16.msra.mxu0 %v3542_v35 }
 0x31a   :  { %2973 = vmatprep.subr.bf16.mxu0 %v3375_v25 }
 0x31b   :  { %2685 = vmatmul.mubr.f32.vlgmr.msra.gmra.mrb[0].mxu1 %v3377_v39 }
 0x31c   :  { %2957 = vmatpush3.bf16.msra.mxu1 %v3539_v33  ;;  %2706 = vmatprep.mubr.msk.f32.mxu1 %vm3376_vm1, %v3377_v39 }
 0x31d   :  { %2958 = vmatprep.subr.bf16.mxu1 %v3375_v25 }
 0x320   :  { %2960 = vmatpush3.bf16.msra.mxu1 %v3547_v40 }
 0x321   :  { %2961 = vmatprep.subr.bf16.mxu1 %v3375_v25 }
 0x3e6   :  { %v495_v59 = vpop.f32.mrb[8].mxu0 }
 0x3e7   :  { %v499_v60 = vadd.f32 %v495_v59, %v217_v58  ;;  %v2697_v61 = vpop.f32.mrb[9].mxu0 }
 0x3e9   :  { %3125 = vtanh.f32 %v499_v60  ;;  %v2476_v4 = vmul.f32 -1.442695, %v499_v60 }
 0x3ee   :  { %v424_v63 = vpop.f32.mrb[0].mxu1 }
 0x3ef   :  { %v3081_v0 = vadd.f32 %v3603_v62, %v424_v63  ;;  %v2686_v1 = vpop.f32.mrb[1].mxu1 }
 0x3f1   :  { %3127 = vtanh.f32 %v3081_v0  ;;  %v2475_v5 = vmul.f32 -1.442695, %v3081_v0 }
 0x3f2   :  { %3129 = vpow2.f32 %v2476_v4 }
 0x3f3   :  { %v3126_v2 = vpop.eup %3125  ;;  %3131 = vpow2.f32 %v2475_v5 }
 0x3f4   :  { %533 = vrot.lane.b32.xlu0 %v3126_v2, %s3374_s1 }
 0x3fb   :  { %v3128_v3 = vpop.eup %3127 }
 0x3fc   :  { %509 = vrot.lane.b32.xlu1 %v3128_v3, %s3374_s1  ;;  %v3130_v6 = vpop.eup %3129 }
 0x3fd   :  { %v527_v7 = vadd.f32 1.0, %v3130_v6  ;;  %v3132_v9 = vpop.eup %3131 }
 0x3fe   :  { %v503_v10 = vadd.f32 1.0, %v3132_v9 }
 0x3ff   :  { %3133 = vrcp.f32 %v527_v7 }
 0x400   :  { %3135 = vrcp.f32 %v503_v10 }
 0x409   :  { %v3134_v11 = vpop.eup %3133 }
 0x40a   :  { %v3136_v14 = vpop.eup %3135  ;;  %v531_v17 = vmul.f32 %v3134_v11, %v3528_v21 }
 0x40b   :  { %v507_v20 = vmul.f32 0.0, %v3136_v14 }
 0x466   :  { %v534_v12 = vpop.permute.xlu0 %533 }
 0x467   :  { %v536_v13 = vmul.f32 %v3134_v11, %v534_v12 }
 0x469   :  { %538 = vrot.lane.b32.xlu0 %v536_v13, %s3374_s1 }
 0x46e   :  { %v510_v15 = vpop.permute.xlu1 %509 }
 0x46f   :  { %v512_v16 = vmul.f32 %v3136_v14, %v510_v15 }
 0x471   :  { %514 = vrot.lane.b32.xlu1 %v512_v16, %s3374_s1 }
 0x4db   :  { %v539_v18 = vpop.permute.xlu0 %538 }
 0x4dc   :  { %v3611_v19 = vadd.f32 %v539_v18, %v531_v17  ;;  %v227_v17 = vadd.f32 %v3561_v45, %v3521_v8 }
 0x4de   :  { %3137 = vtanh.f32 %v3611_v19 }
 0x4e3   :  { %v515_v22 = vpop.permute.xlu1 %514 }
 0x4e4   :  { %v3614_v23 = vadd.f32 %v515_v22, %v507_v20 }
 0x4e6   :  { %3139 = vtanh.f32 %v3614_v23 }
 0x4e8   :  { %v3138_v24 = vpop.eup %3137 }
 0x4e9   :  { %544 = vrot.lane.b32.xlu0 %v3138_v24, %s3374_s1 }
 0x4f0   :  { %v3140_v27 = vpop.eup %3139 }
 0x4f1   :  { %520 = vrot.lane.b32.xlu1 %v3140_v27, %s3374_s1 }
 0x55b   :  { %v545_v28 = vpop.permute.xlu0 %544 }
 0x55c   :  { %v547_v29 = vmul.f32 %v3134_v11, %v545_v28 }
 0x55e   :  { %550 = vrot.lane.b32.xlu0 %v547_v29, %s3378_s25 }
 0x563   :  { %v521_v21 = vpop.permute.xlu1 %520 }
 0x564   :  { %v3620_v30 = vmul.f32 %v3136_v14, %v521_v21 }
 0x566   :  { %625 = vrot.lane.b32.xlu1 %v3620_v30, %s3378_s25 }
 0x5d0   :  { %v551_v31 = vpop.permute.xlu0 %550 }
 0x5d1   :  { %2707 = vmatmul.mubr.msk.f32.vlgmr.msra.gmra.mrb[2].mxu1 %vm120_vm0, %v551_v31  ;;  %2729 = vmatmul.mubr.msk.f32.vlgmr.msra.gmra.mrb[10].mxu0 %vm120_vm0, %v551_v31 }
 0x5d2   :  { %2963 = vmatpush3.bf16.msra.mxu1 %v3573_v53  ;;  %2717 = vmatprep.mubr.msk.f32.mxu1 %vm3376_vm1, %v3377_v39 }
 0x5d3   :  { %2964 = vmatprep.subr.bf16.mxu1 %v3375_v25  ;;  %2975 = vmatpush3.bf16.msra.mxu0 %v3539_v33 }
 0x5d4   :  { %2976 = vmatprep.subr.bf16.mxu0 %v3375_v25  ;;  %2739 = vmatprep.mubr.msk.f32.mxu0 %vm3376_vm1, %v3377_v39 }
 0x5d6   :  { %2966 = vmatpush3.bf16.msra.mxu1 %v3578_v57 }
 0x5d7   :  { %2985 = vmatprep.subr.bf16.mxu1 %v3375_v25  ;;  %2978 = vmatpush3.bf16.msra.mxu0 %v3547_v40 }
 0x5d8   :  { %v626_v32 = vpop.permute.xlu1 %625  ;;  %2979 = vmatprep.subr.bf16.mxu0 %v3375_v25 }
 0x5d9   :  { %2718 = vmatmul.mubr.msk.f32.vlgmr.msra.gmra.mrb[2].mxu1 %vm120_vm0, %v626_v32 }
 0x5da   :  { %2987 = vmatpush3.bf16.msra.mxu1 %v3532_v26  ;;  %2761 = vmatprep.mubr.msk.f32.mxu1 %vm3376_vm1, %v3377_v39 }
 0x5db   :  { %2988 = vmatprep.subr.bf16.mxu1 %v3375_v25 }
 0x5de   :  { %2990 = vmatpush3.bf16.msra.mxu1 %v3542_v35 }
 0x5df   :  { %2991 = vmatprep.subr.bf16.mxu1 %v3375_v25 }
 0x6a4   :  { %v766_v36 = vpop.f32.mrb[10].mxu0 }
 0x6a5   :  { %v770_v37 = vadd.f32 %v766_v36, %v222_v34  ;;  %v2730_v38 = vpop.f32.mrb[11].mxu0 }
 0x6a7   :  { %3141 = vtanh.f32 %v770_v37  ;;  %v2481_v52 = vmul.f32 -1.442695, %v770_v37 }
 0x6ac   :  { %v695_v41 = vpop.f32.mrb[2].mxu1 }
 0x6ad   :  { %v3082_v42 = vadd.f32 %v3603_v62, %v695_v41  ;;  %v2719_v43 = vpop.f32.mrb[3].mxu1 }
 0x6af   :  { %3143 = vtanh.f32 %v3082_v42  ;;  %v2480_v54 = vmul.f32 -1.442695, %v3082_v42 }
 0x6b0   :  { %3145 = vpow2.f32 %v2481_v52 }
 0x6b1   :  { %v3142_v44 = vpop.eup %3141  ;;  %3147 = vpow2.f32 %v2480_v54 }
 0x6b2   :  { %804 = vrot.lane.b32.xlu0 %v3142_v44, %s3374_s1 }
 0x6b9   :  { %v3144_v51 = vpop.eup %3143 }
 0x6ba   :  { %780 = vrot.lane.b32.xlu1 %v3144_v51, %s3374_s1  ;;  %v3146_v46 = vpop.eup %3145 }
 0x6bb   :  { %v798_v55 = vadd.f32 1.0, %v3146_v46  ;;  %v3148_v56 = vpop.eup %3147 }
 0x6bc   :  { %v774_v58 = vadd.f32 1.0, %v3148_v56 }
 0x6bd   :  { %3149 = vrcp.f32 %v798_v55 }
 0x6be   :  { %3151 = vrcp.f32 %v774_v58 }
 0x6c7   :  { %v3150_v59 = vpop.eup %3149 }
 0x6c8   :  { %v3152_v63 = vpop.eup %3151  ;;  %v802_v2 = vmul.f32 %v3150_v59, %v3611_v19 }
 0x6c9   :  { %v778_v5 = vmul.f32 %v3152_v63, %v3614_v23 }
 0x724   :  { %v805_v60 = vpop.permute.xlu0 %804 }
 0x725   :  { %v807_v61 = vmul.f32 %v3150_v59, %v805_v60 }
 0x727   :  { %809 = vrot.lane.b32.xlu0 %v807_v61, %s3374_s1 }
 0x72c   :  { %v781_v0 = vpop.permute.xlu1 %780 }
 0x72d   :  { %v783_v1 = vmul.f32 %v3152_v63, %v781_v0 }
 0x72f   :  { %785 = vrot.lane.b32.xlu1 %v783_v1, %s3374_s1 }
 0x799   :  { %v810_v3 = vpop.permute.xlu0 %809 }
 0x79a   :  { %v3653_v4 = vadd.f32 %v810_v3, %v802_v2  ;;  %v232_v3 = vadd.f32 %v3521_v8, %v3567_v48 }
 0x79c   :  { %3153 = vtanh.f32 %v3653_v4 }
 0x7a1   :  { %v786_v6 = vpop.permute.xlu1 %785 }
 0x7a2   :  { %v3657_v7 = vadd.f32 %v786_v6, %v778_v5 }
 0x7a4   :  { %3155 = vtanh.f32 %v3657_v7 }
 0x7a6   :  { %v3154_v9 = vpop.eup %3153 }
 0x7a7   :  { %815 = vrot.lane.b32.xlu0 %v3154_v9, %s3374_s1 }
 0x7ae   :  { %v3156_v10 = vpop.eup %3155 }
 0x7af   :  { %791 = vrot.lane.b32.xlu1 %v3156_v10, %s3374_s1 }
 0x819   :  { %v816_v11 = vpop.permute.xlu0 %815 }
 0x81a   :  { %v818_v12 = vmul.f32 %v3150_v59, %v816_v11 }
 0x81c   :  { %821 = vrot.lane.b32.xlu0 %v818_v12, %s3378_s25 }
 0x821   :  { %v792_v13 = vpop.permute.xlu1 %791 }
 0x822   :  { %v3663_v14 = vmul.f32 %v3152_v63, %v792_v13 }
 0x824   :  { %896 = vrot.lane.b32.xlu1 %v3663_v14, %s3378_s25  ;;  %v819_v63 = vadd.f32 %v3663_v14, %v3620_v30 }
 0x88e   :  { %v822_v15 = vpop.permute.xlu0 %821 }
 0x88f   :  { %2740 = vmatmul.mubr.msk.f32.vlgmr.msra.gmra.mrb[12].mxu0 %vm120_vm0, %v822_v15  ;;  %2762 = vmatmul.mubr.msk.f32.vlgmr.msra.gmra.mrb[4].mxu1 %vm120_vm0, %v822_v15 }
 0x890   :  { %2981 = vmatpush3.bf16.msra.mxu0 %v3573_v53  ;;  %2750 = vmatprep.mubr.msk.f32.mxu0 %vm3376_vm1, %v3377_v39 }
 0x891   :  { %2982 = vmatprep.subr.bf16.mxu0 %v3375_v25  ;;  %2993 = vmatpush3.bf16.msra.mxu1 %v3539_v33 }
 0x892   :  { %2994 = vmatprep.subr.bf16.mxu1 %v3375_v25  ;;  %2772 = vmatprep.mubr.msk.f32.mxu1 %vm3376_vm1, %v3377_v39 }
 0x894   :  { %2984 = vmatpush3.bf16.msra.mxu0 %v3578_v57 }
 0x895   :  { %3003 = vmatprep.subr.bf16.mxu0 %v3375_v25  ;;  %2996 = vmatpush3.bf16.msra.mxu1 %v3547_v40 }
 0x896   :  { %v897_v16 = vpop.permute.xlu1 %896  ;;  %2997 = vmatprep.subr.bf16.mxu1 %v3375_v25 }
 0x897   :  { %2751 = vmatmul.mubr.msk.f32.vlgmr.msra.gmra.mrb[12].mxu0 %vm120_vm0, %v897_v16 }
 0x898   :  { %3005 = vmatpush3.bf16.msra.mxu0 %v3532_v26  ;;  %2794 = vmatprep.mubr.msk.f32.mxu0 %vm3376_vm1, %v3377_v39 }
 0x899   :  { %3006 = vmatprep.subr.bf16.mxu0 %v3375_v25 }
 0x89c   :  { %3008 = vmatpush3.bf16.msra.mxu0 %v3542_v35 }
 0x89d   :  { %3009 = vmatprep.subr.bf16.mxu0 %v3375_v25 }
 0x962   :  { %v1037_v18 = vpop.f32.mrb[4].mxu1 }
 0x963   :  { %v1041_v19 = vadd.f32 %v1037_v18, %v227_v17  ;;  %v2763_v20 = vpop.f32.mrb[5].mxu1 }
 0x965   :  { %3157 = vtanh.f32 %v1041_v19  ;;  %v2486_v29 = vmul.f32 -1.442695, %v1041_v19 }
 0x96a   :  { %v966_v22 = vpop.f32.mrb[12].mxu0 }
 0x96b   :  { %v3083_v23 = vadd.f32 %v3603_v62, %v966_v22  ;;  %v2752_v24 = vpop.f32.mrb[13].mxu0 }
 0x96d   :  { %3159 = vtanh.f32 %v3083_v23  ;;  %v2485_v21 = vmul.f32 -1.442695, %v3083_v23 }
 0x96e   :  { %3161 = vpow2.f32 %v2486_v29 }
 0x96f   :  { %v3158_v27 = vpop.eup %3157  ;;  %3163 = vpow2.f32 %v2485_v21 }
 0x970   :  { %1075 = vrot.lane.b32.xlu0 %v3158_v27, %s3374_s1 }
 0x977   :  { %v3160_v28 = vpop.eup %3159 }
 0x978   :  { %1051 = vrot.lane.b32.xlu1 %v3160_v28, %s3374_s1  ;;  %v3162_v45 = vpop.eup %3161 }
 0x979   :  { %v1069_v31 = vadd.f32 1.0, %v3162_v45  ;;  %v3164_v32 = vpop.eup %3163 }
 0x97a   :  { %v1045_v34 = vadd.f32 1.0, %v3164_v32 }
 0x97b   :  { %3165 = vrcp.f32 %v1069_v31 }
 0x97c   :  { %3167 = vrcp.f32 %v1045_v34 }
 0x985   :  { %v3166_v36 = vpop.eup %3165 }
 0x986   :  { %v3168_v41 = vpop.eup %3167  ;;  %v1073_v44 = vmul.f32 %v3166_v36, %v3653_v4 }
 0x987   :  { %v1049_v54 = vmul.f32 %v3168_v41, %v3657_v7 }
 0x9e2   :  { %v1076_v37 = vpop.permute.xlu0 %1075 }
 0x9e3   :  { %v1078_v38 = vmul.f32 %v3166_v36, %v1076_v37 }
 0x9e5   :  { %1080 = vrot.lane.b32.xlu0 %v1078_v38, %s3374_s1 }
 0x9ea   :  { %v1052_v42 = vpop.permute.xlu1 %1051 }
 0x9eb   :  { %v1054_v43 = vmul.f32 %v3168_v41, %v1052_v42 }
 0x9ed   :  { %1056 = vrot.lane.b32.xlu1 %v1054_v43, %s3374_s1 }
 0xa57   :  { %v1081_v51 = vpop.permute.xlu0 %1080 }
 0xa58   :  { %v3696_v52 = vadd.f32 %v1081_v51, %v1073_v44  ;;  %v237_v51 = vadd.f32 %v3565_v47, %v3521_v8 }
 0xa5a   :  { %3169 = vtanh.f32 %v3696_v52 }
 0xa5f   :  { %v1057_v46 = vpop.permute.xlu1 %1056 }
 0xa60   :  { %v3700_v55 = vadd.f32 %v1057_v46, %v1049_v54 }
 0xa62   :  { %3171 = vtanh.f32 %v3700_v55 }
 0xa64   :  { %v3170_v56 = vpop.eup %3169 }
 0xa65   :  { %1086 = vrot.lane.b32.xlu0 %v3170_v56, %s3374_s1 }
 0xa6c   :  { %v3172_v58 = vpop.eup %3171 }
 0xa6d   :  { %1062 = vrot.lane.b32.xlu1 %v3172_v58, %s3374_s1 }
 0xad7   :  { %v1087_v59 = vpop.permute.xlu0 %1086 }
 0xad8   :  { %v1089_v60 = vmul.f32 %v3166_v36, %v1087_v59 }
 0xada   :  { %1092 = vrot.lane.b32.xlu0 %v1089_v60, %s3378_s25 }
 0xadf   :  { %v1063_v61 = vpop.permute.xlu1 %1062 }
 0xae0   :  { %v1065_v0 = vmul.f32 %v3168_v41, %v1063_v61 }
 0xae2   :  { %v3708_v1 = vadd.f32 %v1065_v0, %v819_v63  ;;  %1167 = vrot.lane.b32.xlu1 %v1065_v0, %s3378_s25 }
 0xb4c   :  { %v1093_v2 = vpop.permute.xlu0 %1092 }
 0xb4d   :  { %2773 = vmatmul.mubr.msk.f32.vlgmr.msra.gmra.mrb[6].mxu1 %vm120_vm0, %v1093_v2  ;;  %2795 = vmatmul.mubr.msk.f32.vlgmr.msra.gmra.mrb[14].mxu0 %vm120_vm0, %v1093_v2 }
 0xb4e   :  { %2999 = vmatpush3.bf16.msra.mxu1 %v3573_v53  ;;  %2783 = vmatprep.mubr.msk.f32.mxu1 %vm3376_vm1, %v3377_v39 }
 0xb4f   :  { %3000 = vmatprep.subr.bf16.mxu1 %v3375_v25  ;;  %3011 = vmatpush3.bf16.msra.mxu0 %v3539_v33 }
 0xb50   :  { %3012 = vmatprep.subr.bf16.mxu0 %v3375_v25  ;;  %2805 = vmatprep.mubr.msk.f32.mxu0 %vm3376_vm1, %v3377_v39 }
 0xb52   :  { %3002 = vmatpush3.bf16.msra.mxu1 %v3578_v57 }
 0xb53   :  { %3021 = vmatprep.subr.bf16.mxu1 %v3375_v25  ;;  %3014 = vmatpush3.bf16.msra.mxu0 %v3547_v40 }
 0xb54   :  { %v1168_v30 = vpop.permute.xlu1 %1167  ;;  %3015 = vmatprep.subr.bf16.mxu0 %v3375_v25 }
 0xb55   :  { %2784 = vmatmul.mubr.msk.f32.vlgmr.msra.gmra.mrb[6].mxu1 %vm120_vm0, %v1168_v30 }
 0xb56   :  { %3023 = vmatpush3.bf16.msra.mxu1 %v3532_v26  ;;  %2827 = vmatprep.mubr.msk.f32.mxu1 %vm3376_vm1, %v3377_v39 }
 0xb57   :  { %3024 = vmatprep.subr.bf16.mxu1 %v3375_v25 }
 0xb5a   :  { %3026 = vmatpush3.bf16.msra.mxu1 %v3542_v35 }
 0xb5b   :  { %3027 = vmatprep.subr.bf16.mxu1 %v3375_v25 }
 0xc20   :  { %v1308_v4 = vpop.f32.mrb[14].mxu0 }
 0xc21   :  { %v1312_v5 = vadd.f32 %v1308_v4, %v232_v3  ;;  %v2796_v6 = vpop.f32.mrb[15].mxu0 }
 0xc23   :  { %3173 = vtanh.f32 %v1312_v5  ;;  %v2491_v13 = vmul.f32 -1.442695, %v1312_v5 }
 0xc28   :  { %v1237_v7 = vpop.f32.mrb[6].mxu1 }
 0xc29   :  { %v3084_v9 = vadd.f32 %v3603_v62, %v1237_v7  ;;  %v2785_v10 = vpop.f32.mrb[7].mxu1 }
 0xc2b   :  { %3175 = vtanh.f32 %v3084_v9  ;;  %v2490_v14 = vmul.f32 -1.442695, %v3084_v9 }
 0xc2c   :  { %3177 = vpow2.f32 %v2491_v13 }
 0xc2d   :  { %v3174_v11 = vpop.eup %3173  ;;  %3179 = vpow2.f32 %v2490_v14 }
 0xc2e   :  { %1346 = vrot.lane.b32.xlu0 %v3174_v11, %s3374_s1 }
 0xc35   :  { %v3176_v12 = vpop.eup %3175 }
 0xc36   :  { %1322 = vrot.lane.b32.xlu1 %v3176_v12, %s3374_s1  ;;  %v3178_v48 = vpop.eup %3177 }
 0xc37   :  { %v1340_v15 = vadd.f32 1.0, %v3178_v48  ;;  %v3180_v16 = vpop.eup %3179 }
 0xc38   :  { %v1316_v17 = vadd.f32 1.0, %v3180_v16 }
 0xc39   :  { %3181 = vrcp.f32 %v1340_v15 }
 0xc3a   :  { %3183 = vrcp.f32 %v1316_v17 }
 0xc43   :  { %v3182_v18 = vpop.eup %3181 }
 0xc44   :  { %v3184_v22 = vpop.eup %3183  ;;  %v1344_v27 = vmul.f32 %v3182_v18, %v3696_v52 }
 0xc45   :  { %v1320_v21 = vmul.f32 %v3184_v22, %v3700_v55 }
 0xca0   :  { %v1347_v19 = vpop.permute.xlu0 %1346 }
 0xca1   :  { %v1349_v20 = vmul.f32 %v3182_v18, %v1347_v19 }
 0xca3   :  { %1351 = vrot.lane.b32.xlu0 %v1349_v20, %s3374_s1 }
 0xca8   :  { %v1323_v23 = vpop.permute.xlu1 %1322 }
 0xca9   :  { %v1325_v24 = vmul.f32 %v3184_v22, %v1323_v23 }
 0xcab   :  { %1327 = vrot.lane.b32.xlu1 %v1325_v24, %s3374_s1  ;;  %v242_v24 = vadd.f32 %v3521_v8, %v3571_v50 }
 0xd15   :  { %v1352_v28 = vpop.permute.xlu0 %1351 }
 0xd16   :  { %v3740_v29 = vadd.f32 %v1352_v28, %v1344_v27 }
 0xd18   :  { %3185 = vtanh.f32 %v3740_v29 }
 0xd1d   :  { %v1328_v45 = vpop.permute.xlu1 %1327 }
 0xd1e   :  { %v3744_v31 = vadd.f32 %v1328_v45, %v1320_v21 }
 0xd20   :  { %3187 = vtanh.f32 %v3744_v31 }
 0xd22   :  { %v3186_v32 = vpop.eup %3185 }
 0xd23   :  { %1357 = vrot.lane.b32.xlu0 %v3186_v32, %s3374_s1 }
 0xd2a   :  { %v3188_v34 = vpop.eup %3187 }
 0xd2b   :  { %1333 = vrot.lane.b32.xlu1 %v3188_v34, %s3374_s1 }
 0xd95   :  { %v1358_v36 = vpop.permute.xlu0 %1357 }
 0xd96   :  { %v1360_v37 = vmul.f32 %v3182_v18, %v1358_v36 }
 0xd98   :  { %1363 = vrot.lane.b32.xlu0 %v1360_v37, %s3378_s25 }
 0xd9d   :  { %v1334_v38 = vpop.permute.xlu1 %1333 }
 0xd9e   :  { %v1336_v41 = vmul.f32 %v3184_v22, %v1334_v38 }
 0xda0   :  { %v3751_v42 = vadd.f32 %v1336_v41, %v3708_v1  ;;  %1438 = vrot.lane.b32.xlu1 %v1336_v41, %s3378_s25 }
 0xe0a   :  { %v1364_v43 = vpop.permute.xlu0 %1363 }
 0xe0b   :  { %2806 = vmatmul.mubr.msk.f32.vlgmr.msra.gmra.mrb[16].mxu0 %vm120_vm0, %v1364_v43  ;;  %2828 = vmatmul.mubr.msk.f32.vlgmr.msra.gmra.mrb[8].mxu1 %vm120_vm0, %v1364_v43 }
 0xe0c   :  { %3017 = vmatpush3.bf16.msra.mxu0 %v3573_v53  ;;  %2816 = vmatprep.mubr.msk.f32.mxu0 %vm3376_vm1, %v3377_v39 }
 0xe0d   :  { %3018 = vmatprep.subr.bf16.mxu0 %v3375_v25  ;;  %3029 = vmatpush3.bf16.msra.mxu1 %v3539_v33 }
 0xe0e   :  { %3030 = vmatprep.subr.bf16.mxu1 %v3375_v25  ;;  %2838 = vmatprep.mubr.msk.f32.mxu1 %vm3376_vm1, %v3377_v39 }
 0xe10   :  { %3020 = vmatpush3.bf16.msra.mxu0 %v3578_v57 }
 0xe11   :  { %3039 = vmatprep.subr.bf16.mxu0 %v3375_v25  ;;  %3032 = vmatpush3.bf16.msra.mxu1 %v3547_v40 }
 0xe12   :  { %v1439_v44 = vpop.permute.xlu1 %1438  ;;  %3033 = vmatprep.subr.bf16.mxu1 %v3375_v25 }
 0xe13   :  { %2817 = vmatmul.mubr.msk.f32.vlgmr.msra.gmra.mrb[16].mxu0 %vm120_vm0, %v1439_v44 }
 0xe14   :  { %3041 = vmatpush3.bf16.msra.mxu0 %v3532_v26  ;;  %2860 = vmatprep.mubr.msk.f32.mxu0 %vm3376_vm1, %v3377_v39 }
 0xe15   :  { %3042 = vmatprep.subr.bf16.mxu0 %v3375_v25 }
 0xe18   :  { %3044 = vmatpush3.bf16.msra.mxu0 %v3542_v35 }
 0xe19   :  { %3045 = vmatprep.subr.bf16.mxu0 %v3375_v25 }
 0xede   :  { %v1579_v52 = vpop.f32.mrb[8].mxu1 }
 0xedf   :  { %v1583_v54 = vadd.f32 %v1579_v52, %v237_v51  ;;  %v2829_v46 = vpop.f32.mrb[9].mxu1 }
 0xee1   :  { %3189 = vtanh.f32 %v1583_v54  ;;  %v2496_v61 = vmul.f32 -1.442695, %v1583_v54 }
 0xee6   :  { %v1508_v55 = vpop.f32.mrb[16].mxu0 }
 0xee7   :  { %v3085_v56 = vadd.f32 %v3603_v62, %v1508_v55  ;;  %v2818_v58 = vpop.f32.mrb[17].mxu0 }
 0xee9   :  { %3191 = vtanh.f32 %v3085_v56  ;;  %v2495_v63 = vmul.f32 -1.442695, %v3085_v56 }
 0xeea   :  { %3193 = vpow2.f32 %v2496_v61 }
 0xeeb   :  { %v3190_v59 = vpop.eup %3189  ;;  %3195 = vpow2.f32 %v2495_v63 }
 0xeec   :  { %1617 = vrot.lane.b32.xlu0 %v3190_v59, %s3374_s1 }
 0xef3   :  { %v3192_v60 = vpop.eup %3191 }
 0xef4   :  { %1593 = vrot.lane.b32.xlu1 %v3192_v60, %s3374_s1  ;;  %v3194_v47 = vpop.eup %3193 }
 0xef5   :  { %v1611_v0 = vadd.f32 1.0, %v3194_v47  ;;  %v3196_v1 = vpop.eup %3195 }
 0xef6   :  { %v1587_v2 = vadd.f32 1.0, %v3196_v1 }
 0xef7   :  { %3197 = vrcp.f32 %v1611_v0 }
 0xef8   :  { %3199 = vrcp.f32 %v1587_v2 }
 0xf01   :  { %v3198_v30 = vpop.eup %3197 }
 0xf02   :  { %v3200_v5 = vpop.eup %3199  ;;  %v1615_v9 = vmul.f32 %v3198_v30, %v3740_v29 }
 0xf03   :  { %v1591_v12 = vmul.f32 %v3200_v5, %v3744_v31 }
 0xf5e   :  { %v1618_v3 = vpop.permute.xlu0 %1617 }
 0xf5f   :  { %v1620_v4 = vmul.f32 %v3198_v30, %v1618_v3 }
 0xf61   :  { %1622 = vrot.lane.b32.xlu0 %v1620_v4, %s3374_s1 }
 0xf66   :  { %v1594_v6 = vpop.permute.xlu1 %1593 }
 0xf67   :  { %v1596_v7 = vmul.f32 %v3200_v5, %v1594_v6 }
 0xf69   :  { %1598 = vrot.lane.b32.xlu1 %v1596_v7, %s3374_s1 }
 0xfd3   :  { %v1623_v10 = vpop.permute.xlu0 %1622 }
 0xfd4   :  { %v3783_v11 = vadd.f32 %v1623_v10, %v1615_v9 }
 0xfd6   :  { %3201 = vtanh.f32 %v3783_v11 }
 0xfdb   :  { %v1599_v13 = vpop.permute.xlu1 %1598 }
 0xfdc   :  { %v3787_v14 = vadd.f32 %v1599_v13, %v1591_v12 }
 0xfde   :  { %3203 = vtanh.f32 %v3787_v14 }
 0xfe0   :  { %v3202_v48 = vpop.eup %3201 }
 0xfe1   :  { %1628 = vrot.lane.b32.xlu0 %v3202_v48, %s3374_s1 }
 0xfe8   :  { %v3204_v15 = vpop.eup %3203 }
 0xfe9   :  { %1604 = vrot.lane.b32.xlu1 %v3204_v15, %s3374_s1 }
0x1053   :  { %v1629_v16 = vpop.permute.xlu0 %1628 }
0x1054   :  { %v1631_v17 = vmul.f32 %v3198_v30, %v1629_v16 }
0x1056   :  { %1634 = vrot.lane.b32.xlu0 %v1631_v17, %s3378_s25 }
0x105b   :  { %v1605_v18 = vpop.permute.xlu1 %1604 }
0x105c   :  { %v1607_v19 = vmul.f32 %v3200_v5, %v1605_v18 }
0x105e   :  { %v3794_v20 = vadd.f32 %v1607_v19, %v3751_v42  ;;  %1709 = vrot.lane.b32.xlu1 %v1607_v19, %s3378_s25 }
0x10c8   :  { %v1635_v22 = vpop.permute.xlu0 %1634 }
0x10c9   :  { %2839 = vmatmul.mubr.msk.f32.vlgmr.msra.gmra.mrb[10].mxu1 %vm120_vm0, %v1635_v22  ;;  %2861 = vmatmul.mubr.msk.f32.vlgmr.msra.gmra.mrb[18].mxu0 %vm120_vm0, %v1635_v22 }
0x10ca   :  { %3035 = vmatpush3.bf16.msra.mxu1 %v3573_v53  ;;  %2849 = vmatprep.mubr.msk.f32.mxu1 %vm3376_vm1, %v3377_v39 }
0x10cb   :  { %3036 = vmatprep.subr.bf16.mxu1 %v3375_v25  ;;  %3047 = vmatpush3.bf16.msra.mxu0 %v3539_v33 }
0x10cc   :  { %3048 = vmatprep.subr.bf16.mxu0 %v3375_v25  ;;  %2871 = vmatprep.mubr.msk.f32.mxu0 %vm3376_vm1, %v3377_v39 }
0x10ce   :  { %3038 = vmatpush3.bf16.msra.mxu1 %v3578_v57 }
0x10cf   :  { %3057 = vmatprep.subr.bf16.mxu1 %v3375_v25  ;;  %3050 = vmatpush3.bf16.msra.mxu0 %v3547_v40 }
0x10d0   :  { %v1710_v23 = vpop.permute.xlu1 %1709  ;;  %3051 = vmatprep.subr.bf16.mxu0 %v3375_v25 }
0x10d1   :  { %2850 = vmatmul.mubr.msk.f32.vlgmr.msra.gmra.mrb[10].mxu1 %vm120_vm0, %v1710_v23 }
0x10d2   :  { %3059 = vmatpush3.bf16.msra.mxu1 %v3532_v26  ;;  %2893 = vmatprep.mubr.msk.f32.mxu1 %vm3376_vm1, %v3377_v39 }
0x10d3   :  { %3060 = vmatprep.subr.bf16.mxu1 %v3375_v25 }
0x10d6   :  { %3062 = vmatpush3.bf16.msra.mxu1 %v3542_v35 }
0x10d7   :  { %3063 = vmatprep.subr.bf16.mxu1 %v3375_v25 }
0x119c   :  { %v1850_v27 = vpop.f32.mrb[18].mxu0 }
0x119d   :  { %v1854_v28 = vadd.f32 %v1850_v27, %v242_v24  ;;  %v2862_v29 = vpop.f32.mrb[19].mxu0 }
0x119f   :  { %3205 = vtanh.f32 %v1854_v28  ;;  %v2501_v35 = vmul.f32 -1.442695, %v1854_v28 }
0x11a4   :  { %v1779_v21 = vpop.f32.mrb[10].mxu1 }
0x11a5   :  { %v3086_v45 = vadd.f32 %v3603_v62, %v1779_v21  ;;  %v2851_v26 = vpop.f32.mrb[11].mxu1 }
0x11a7   :  { %3207 = vtanh.f32 %v3086_v45  ;;  %v2500_v34 = vmul.f32 -1.442695, %v3086_v45 }
0x11a8   :  { %3209 = vpow2.f32 %v2501_v35 }
0x11a9   :  { %v3206_v31 = vpop.eup %3205  ;;  %3211 = vpow2.f32 %v2500_v34 }
0x11aa   :  { %1888 = vrot.lane.b32.xlu0 %v3206_v31, %s3374_s1 }
0x11b1   :  { %v3208_v32 = vpop.eup %3207 }
0x11b2   :  { %1864 = vrot.lane.b32.xlu1 %v3208_v32, %s3374_s1  ;;  %v3210_v8 = vpop.eup %3209 }
0x11b3   :  { %v1882_v50 = vadd.f32 1.0, %v3210_v8  ;;  %v3212_v36 = vpop.eup %3211 }
0x11b4   :  { %v1858_v37 = vadd.f32 1.0, %v3212_v36 }
0x11b5   :  { %3213 = vrcp.f32 %v1882_v50 }
0x11b6   :  { %3215 = vrcp.f32 %v1858_v37 }
0x11bf   :  { %v3214_v38 = vpop.eup %3213 }
0x11c0   :  { %v3216_v43 = vpop.eup %3215  ;;  %v1886_v52 = vmul.f32 %v3214_v38, %v3783_v11 }
0x11c1   :  { %v1862_v55 = vmul.f32 %v3216_v43, %v3787_v14 }
0x121c   :  { %v1889_v41 = vpop.permute.xlu0 %1888 }
0x121d   :  { %v1891_v42 = vmul.f32 %v3214_v38, %v1889_v41 }
0x121f   :  { %1893 = vrot.lane.b32.xlu0 %v1891_v42, %s3374_s1 }
0x1224   :  { %v1865_v44 = vpop.permute.xlu1 %1864 }
0x1225   :  { %v1867_v51 = vmul.f32 %v3216_v43, %v1865_v44 }
0x1227   :  { %1869 = vrot.lane.b32.xlu1 %v1867_v51, %s3374_s1 }
0x1291   :  { %v1894_v54 = vpop.permute.xlu0 %1893 }
0x1292   :  { %v3826_v46 = vadd.f32 %v1894_v54, %v1886_v52 }
0x1294   :  { %3217 = vtanh.f32 %v3826_v46 }
0x1299   :  { %v1870_v56 = vpop.permute.xlu1 %1869 }
0x129a   :  { %v3830_v58 = vadd.f32 %v1870_v56, %v1862_v55  ;;  %v2352_v55 = vld [vmem:[%s3921_s7 + $0x8] sm:$0xff]  ;;  %v2353_v56 = vld [vmem:[%s3921_s7 + $0x10] sm:$0xff] }
0x129c   :  { %3219 = vtanh.f32 %v3830_v58 }
0x129e   :  { %v3218_v59 = vpop.eup %3217 }
0x129f   :  { %1899 = vrot.lane.b32.xlu0 %v3218_v59, %s3374_s1  ;;  %v2354_v59 = vld [vmem:[%s3921_s7 + $0x18] sm:$0xff] }
0x12a6   :  { %v3220_v60 = vpop.eup %3219 }
0x12a7   :  { %1875 = vrot.lane.b32.xlu1 %v3220_v60, %s3374_s1  ;;  %v3079_v60 = vpack.c.bf16 %v2354_v59, %v2353_v56 }
0x1311   :  { %v1900_v61 = vpop.permute.xlu0 %1899 }
0x1312   :  { %v1902_v63 = vmul.f32 %v3214_v38, %v1900_v61 }
0x1314   :  { %1905 = vrot.lane.b32.xlu0 %v1902_v63, %s3378_s25 }
0x1319   :  { %v1876_v47 = vpop.permute.xlu1 %1875 }
0x131a   :  { %v1878_v0 = vmul.f32 %v3216_v43, %v1876_v47 }
0x131c   :  { %v3837_v1 = vadd.f32 %v1878_v0, %v3794_v20  ;;  %1980 = vrot.lane.b32.xlu1 %v1878_v0, %s3378_s25 }
0x1386   :  { %v1906_v2 = vpop.permute.xlu0 %1905 }
0x1387   :  { %2872 = vmatmul.mubr.msk.f32.vlgmr.msra.gmra.mrb[20].mxu0 %vm120_vm0, %v1906_v2  ;;  %2894 = vmatmul.mubr.msk.f32.vlgmr.msra.gmra.mrb[12].mxu1 %vm120_vm0, %v1906_v2  ;;  %v2510_v2 = vld [vmem:[%s3922_s8] ss:$0 sm:$0xff] }
0x1388   :  { %3053 = vmatpush3.bf16.msra.mxu0 %v3573_v53  ;;  %2882 = vmatprep.mubr.msk.f32.mxu0 %vm3376_vm1, %v3377_v39 }
0x1389   :  { %3054 = vmatprep.subr.bf16.mxu0 %v3375_v25  ;;  %3065 = vmatpush3.bf16.msra.mxu1 %v3539_v33  ;;  %v3249_v33 = vld [vmem:[%s3917_s3] ss:$0 sm:$0xff] }
0x138a   :  { %3066 = vmatprep.subr.bf16.mxu1 %v3375_v25  ;;  %2904 = vmatprep.mubr.msk.f32.mxu1 %vm3376_vm1, %v3377_v39  ;;  %v247_v3 = vadd.f32 %v3249_v33, %v3569_v49 }
0x138c   :  { %3056 = vmatpush3.bf16.msra.mxu0 %v3578_v57 }
0x138d   :  { %3068 = vmatpush3.bf16.msra.mxu1 %v3547_v40  ;;  %3075 = vmatprep.subr.bf16.mxu0 %v3375_v25 }
0x138e   :  { %v1981_v30 = vpop.permute.xlu1 %1980  ;;  %3069 = vmatprep.subr.bf16.mxu1 %v3375_v25 }
0x138f   :  { %2883 = vmatmul.mubr.msk.f32.vlgmr.msra.gmra.mrb[20].mxu0 %vm120_vm0, %v1981_v30 }
0x1390   :  { %2926 = vmatprep.mubr.msk.f32.mxu0 %vm3376_vm1, %v3377_v39 }
0x145a   :  { %v2121_v4 = vpop.f32.mrb[12].mxu1 }
0x145b   :  { %v2125_v5 = vadd.f32 %v2121_v4, %v247_v3  ;;  %v2895_v6 = vpop.f32.mrb[13].mxu1 }
0x145d   :  { %3221 = vtanh.f32 %v2125_v5  ;;  %v2506_v12 = vmul.f32 -1.442695, %v2125_v5 }
0x1462   :  { %v2050_v40 = vpop.f32.mrb[20].mxu0 }
0x1463   :  { %v3087_v7 = vadd.f32 %v3603_v62, %v2050_v40  ;;  %v2884_v9 = vpop.f32.mrb[21].mxu0 }
0x1465   :  { %3223 = vtanh.f32 %v3087_v7  ;;  %v2505_v13 = vmul.f32 -1.442695, %v3087_v7 }
0x1466   :  { %3225 = vpow2.f32 %v2506_v12 }
0x1467   :  { %v3222_v10 = vpop.eup %3221  ;;  %3227 = vpow2.f32 %v2505_v13 }
0x1468   :  { %2159 = vrot.lane.b32.xlu0 %v3222_v10, %s3374_s1 }
0x146f   :  { %v3224_v11 = vpop.eup %3223 }
0x1470   :  { %2135 = vrot.lane.b32.xlu1 %v3224_v11, %s3374_s1  ;;  %v3226_v49 = vpop.eup %3225 }
0x1471   :  { %v2153_v14 = vadd.f32 1.0, %v3226_v49  ;;  %v3228_v48 = vpop.eup %3227 }
0x1472   :  { %v2129_v15 = vadd.f32 1.0, %v3228_v48 }
0x1473   :  { %3229 = vrcp.f32 %v2153_v14 }
0x1474   :  { %3231 = vrcp.f32 %v2129_v15 }
0x147d   :  { %v3230_v16 = vpop.eup %3229 }
0x147e   :  { %v3232_v19 = vpop.eup %3231  ;;  %v2157_v23 = vmul.f32 %v3230_v16, %v3826_v46 }
0x147f   :  { %v2133_v28 = vmul.f32 %v3232_v19, %v3830_v58 }
0x14da   :  { %v2160_v17 = vpop.permute.xlu0 %2159 }
0x14db   :  { %v2162_v18 = vmul.f32 %v3230_v16, %v2160_v17 }
0x14dd   :  { %2164 = vrot.lane.b32.xlu0 %v2162_v18, %s3374_s1 }
0x14e2   :  { %v2136_v20 = vpop.permute.xlu1 %2135 }
0x14e3   :  { %v2138_v22 = vmul.f32 %v3232_v19, %v2136_v20 }
0x14e5   :  { %2140 = vrot.lane.b32.xlu1 %v2138_v22, %s3374_s1 }
0x154f   :  { %v2165_v24 = vpop.permute.xlu0 %2164 }
0x1550   :  { %v2167_v27 = vadd.f32 %v2165_v24, %v2157_v23 }
0x1552   :  { %3233 = vtanh.f32 %v2167_v27 }
0x1557   :  { %v2141_v29 = vpop.permute.xlu1 %2140 }
0x1558   :  { %v2143_v21 = vadd.f32 %v2141_v29, %v2133_v28 }
0x155a   :  { %3235 = vtanh.f32 %v2143_v21 }
0x155c   :  { %v3234_v45 = vpop.eup %3233 }
0x155d   :  { %2170 = vrot.lane.b32.xlu0 %v3234_v45, %s3374_s1 }
0x1564   :  { %v3236_v26 = vpop.eup %3235 }
0x1565   :  { %2146 = vrot.lane.b32.xlu1 %v3236_v26, %s3374_s1 }
0x15cf   :  { %v2171_v31 = vpop.permute.xlu0 %2170 }
0x15d0   :  { %v2173_v32 = vmul.f32 %v3230_v16, %v2171_v31 }
0x15d2   :  { %2176 = vrot.lane.b32.xlu0 %v2173_v32, %s3378_s25 }
0x15d7   :  { %v2147_v35 = vpop.permute.xlu1 %2146 }
0x15d8   :  { %v2149_v34 = vmul.f32 %v3232_v19, %v2147_v35 }
0x15da   :  { %v2174_v8 = vadd.f32 %v2149_v34, %v3837_v1  ;;  %2251 = vrot.lane.b32.xlu1 %v2149_v34, %s3378_s25 }
0x1644   :  { %v2177_v50 = vpop.permute.xlu0 %2176 }
0x1645   :  { %2905 = vmatmul.mubr.msk.f32.vlgmr.msra.gmra.mrb[14].mxu1 %vm120_vm0, %v2177_v50 }
0x1646   :  { %3071 = vmatpush3.bf16.msra.mxu1 %v3573_v53  ;;  %2915 = vmatprep.mubr.msk.f32.mxu1 %vm3376_vm1, %v3377_v39 }
0x1647   :  { %3072 = vmatprep.subr.bf16.mxu1 %v3375_v25 }
0x164a   :  { %3074 = vmatpush3.bf16.msra.mxu1 %v3578_v57 }
0x164c   :  { %v2252_v36 = vpop.permute.xlu1 %2251 }
0x164d   :  { %2916 = vmatmul.mubr.msk.f32.vlgmr.msra.gmra.mrb[14].mxu1 %vm120_vm0, %v2252_v36 }
0x1720   :  { %v2321_v37 = vpop.f32.mrb[14].mxu1 }
0x1721   :  { %v3088_v38 = vadd.f32 %v3603_v62, %v2321_v37  ;;  %v2917_v41 = vpop.f32.mrb[15].mxu1  ;;  %v2351_v62 = vld [vmem:[%s3921_s7] sm:$0xff]  ;;  %s3379_s7 = smov [#allocation10]  }
0x1722   :  { %v3076_v58 = vpack.c.bf16 %v2352_v55, %v2351_v62  ;;  %s2451_s4 = sshll.u32 %s3379_s7, 4  ;;  %s2452_s4 = int_to_ptr.vmem [resolvable:$true] %s2451_s4 }
0x1723   :  { %3237 = vtanh.f32 %v3088_v38  ;;  %v2509_v43 = vmul.f32 -1.442695, %v3088_v38  ;;  %s3338_s15 = scalar_lea.vmem %s2452_s4, 128  ;;  %p3343_p5 = scmp.lt.s32.totalorder %s2452_s4, %s2452_s4 }
0x1724   :  { %3077 = vmatpush3.bf16.msra.mxu0 %v3076_v58  ;;  %p3339_p4 = scmp.ne.s32.totalorder %s2452_s4, %s3338_s15  ;;  %p3344_p6 = scmp.lt.s32.totalorder %s3338_s15, %s3338_s15 }
0x1725   :  { %3239 = vpow2.f32 %v2509_v43  ;;  %3078 = vmatprep.subr.bf16.mxu0 %v3375_v25 }
0x1726   :  { %p3345_p7 = por %p3344_p6, %p3343_p5 }
0x1728   :  { %3080 = vmatpush3.bf16.msra.mxu0 %v3079_v60  ;;  %p3346_p8 = pnand %p3345_p7, %p3339_p4 }
0x172d   :  { %v3238_v42 = vpop.eup %3237 }
0x172e   :  { %2335 = vrot.lane.b32.xlu0 %v3238_v42, %s3374_s1 }
0x172f   :  { %v3240_v53 = vpop.eup %3239 }
0x1730   :  { %v2329_v44 = vadd.f32 1.0, %v3240_v53 }
0x1732   :  { %3241 = vrcp.f32 %v2329_v44 }
0x173c   :  { %v3242_v39 = vpop.eup %3241 }
0x173d   :  { %v2333_v57 = vmul.f32 %v3242_v39, %v2143_v21 }
0x17a0   :  { %v2336_v51 = vpop.permute.xlu0 %2335 }
0x17a1   :  { %v2338_v52 = vmul.f32 %v3242_v39, %v2336_v51 }
0x17a3   :  { %2340 = vrot.lane.b32.xlu1 %v2338_v52, %s3374_s1 }
0x1815   :  { %v2341_v54 = vpop.permute.xlu1 %2340 }
0x1816   :  { %v2343_v46 = vadd.f32 %v2341_v54, %v2333_v57 }
0x1818   :  { %3243 = vtanh.f32 %v2343_v46 }
0x1822   :  { %v3244_v61 = vpop.eup %3243 }
0x1823   :  { %2346 = vrot.lane.b32.xlu0 %v3244_v61, %s3374_s1 }
0x1895   :  { %v2347_v63 = vpop.permute.xlu0 %2346 }
0x1896   :  { %v2349_v47 = vmul.f32 %v3242_v39, %v2347_v63 }
0x1898   :  { %v2350_v0 = vadd.f32 %v2349_v47, %v2174_v8 }
0x189a   :  { %2363 = vrot.lane.b32.xlu1 %v2350_v0, %s3378_s25 }
0x190c   :  { %v2364_v1 = vpop.permute.xlu1 %2363 }
0x190d   :  { %2927 = vmatmul.mubr.msk.f32.vlgmr.msra.gmra.mrb[22].mxu0 %vm120_vm0, %v2364_v1 }
0x19e0   :  { %v2433_v30 = vpop.f32.mrb[22].mxu0 }
0x19e1   :  { %v2434_v33 = vadd.f32 %v2510_v2, %v2433_v30  ;;  %v2928_v3 = vpop.f32.mrb[23].mxu0 }
0x19e3   :  { %v2512_v25 = vmul.f32 -1.442695, %v2434_v33 }
0x19e5   :  { %3245 = vpow2.f32 %v2512_v25 }
0x19ef   :  { %v3246_v4 = vpop.eup %3245 }
0x19f0   :  { %v2440_v5 = vadd.f32 1.0, %v3246_v4 }
0x19f2   :  { %3247 = vrcp.f32 %v2440_v5 }
0x19fc   :  { %v3248_v6 = vpop.eup %3247 }
0x19fd   :  { %2444 = vst.msk [vmem:[#allocation10] sm:$0xff] %vm2443_vm2, %v3248_v6 }
0x19fe   :  { %3349 = shalt.err (!%p3346_p8)
}
0x19ff   :  { %s3350_s18 = scalar_lea.hbm %s3923_s9, 128 }
0x1a00   :  { %p3351_p9 = scmp.ne.s32.totalorder %s3923_s9, %s3350_s18  ;;  %p3354_p10 = scmp.lt.u32.totalorder %s3350_s18, %s3923_s9 }
0x1a02   :  { %p3356_p11 = pnand %p3354_p10, %p3351_p9 }
0x1a04   :  { %3359 = shalt.err (!%p3356_p11)
}
0x1a05   :  { %2454 = dma.vmem_to_hbm [thread:$0]  %s2452_s4, 128, %s3923_s9, [#allocation4]  }
0x1a06   :  { %3366 = dma.done.wait [#allocation4], 128  }
0x1a07   :  { %3367 = vsyncadd [#allocation4], 4294967168 }
0x1a08   :  { %2458 = vsyncpa [#allocation3], 1 }
0x1a09   :  { %2459 = vsyncpa [#allocation6], 1 }
0x1a0a   :  { %2460 = vsyncpa [#allocation9], 1 }
0x1a0b   :  { %2461 = vsyncpa [#allocation4], 1 }

</bundles_post_ra>
